<compile_context>
chip_gen: v5e
topology: v5e:2x2
jax: 0.10.0
libtpu: 0.0.40
codegen_flags: <defaults>
</compile_context>

<pallas_src>
import functools

import jax
import jax.numpy as jnp
from jax.experimental import pallas as pl
from jax.experimental.pallas import tpu as pltpu

_SUBLANE = 8
_LANE = 128
_HI = jax.lax.Precision.HIGHEST


def _round_up(v, m):
    return (v + m - 1) // m * m


def rnn_kernel(x_ref, wih_ref, whh_ref, b_ref, wfc_ref, bfc_ref, out_ref,
               *, t_steps, bp):
    """Whole forward pass in one invocation.

    x_ref   : (T*Bp, I)   time-major, batch-padded, already flattened in the wrapper
    wih_ref : (I,  Hp)    W_ih^T, hidden-padded
    whh_ref : (Hp, Hp)    W_hh^T, hidden-padded
    b_ref   : (1,  Hp)    b_ih + b_hh, hidden-padded
    wfc_ref : (Hp, Op)    W_fc^T, padded
    bfc_ref : (1,  Op)    b_fc, padded
    out_ref : (Bp, Op)    FC(h_T), padded, lane-dense
    """
    # Hoist all weights/biases once -> vreg-resident across the serial loop.
    wih = wih_ref[...]
    whh = whh_ref[...]
    b = b_ref[...]
    hp = whh.shape[0]

    # Fused input projection for all time steps: one big MXU matmul, kept in registers.
    xw = jnp.dot(x_ref[...], wih,
                 preferred_element_type=jnp.float32, precision=_HI) + b   # (T*Bp, Hp)

    # Sequential recurrence (inherently serial): fully unrolled, static row slices of
    # the in-register xw value, one (Bp x Hp) @ (Hp x Hp) matmul + tanh per step.
    h = jnp.zeros((bp, hp), jnp.float32)
    for t in range(t_steps):
        pre = xw[t * bp:(t + 1) * bp, :] + jnp.dot(
            h, whh, preferred_element_type=jnp.float32, precision=_HI)
        h = jnp.tanh(pre)

    # FC head on the last hidden state; (Bp, Op) lane-dense store.
    out_ref[...] = (jnp.dot(h, wfc_ref[...],
                            preferred_element_type=jnp.float32, precision=_HI)
                    + bfc_ref[...]).astype(out_ref.dtype)


def image_rnn_forward(x, params):
    """x: (batch, n_steps, n_inputs) float32 -> (batch, n_outputs) float32."""
    w_ih, w_hh, b_ih, b_hh, w_fc, b_fc = params
    batch, n_steps, n_inputs = x.shape
    n_neurons = w_hh.shape[0]
    n_outputs = w_fc.shape[0]

    bp = _round_up(max(batch, _SUBLANE), _SUBLANE)   # batch  -> sublane multiple
    hp = _round_up(n_neurons, _LANE)                 # hidden -> lane multiple
    op = _round_up(n_outputs, _LANE)                 # output -> lane multiple

    # Layout plumbing stays in the wrapper (free in XLA): time-major, batch-padded,
    # flattened to 2D so the kernel never reshapes.
    x_seq2d = jnp.pad(jnp.transpose(x, (1, 0, 2)),
                      ((0, 0), (0, bp - batch), (0, 0))
                      ).reshape(n_steps * bp, n_inputs)                         # (T*Bp, I)

    # Pre-transpose weights to (in, out) and zero-pad to lane-dense shapes.
    wih_p = jnp.pad(jnp.transpose(w_ih), ((0, 0), (0, hp - n_neurons)))         # (I, Hp)
    whh_p = jnp.pad(jnp.transpose(w_hh),
                    ((0, hp - n_neurons), (0, hp - n_neurons)))                 # (Hp, Hp)
    b_p = jnp.pad(b_ih + b_hh, (0, hp - n_neurons)).reshape(1, hp)              # (1, Hp)
    wfc_p = jnp.pad(jnp.transpose(w_fc),
                    ((0, hp - n_neurons), (0, op - n_outputs)))                 # (Hp, Op)
    bfc_p = jnp.pad(b_fc, (0, op - n_outputs)).reshape(1, op)                   # (1, Op)

    flops = (2 * n_steps * bp * n_inputs * hp       # batched input projection
             + 2 * n_steps * bp * hp * hp           # recurrent matmuls
             + 2 * bp * hp * op)                    # FC head
    bytes_accessed = 4 * (x_seq2d.size + wih_p.size + whh_p.size + b_p.size
                          + wfc_p.size + bfc_p.size + bp * op)

    kernel = functools.partial(rnn_kernel, t_steps=n_steps, bp=bp)

    out_padded = pl.pallas_call(
        kernel,
        out_shape=jax.ShapeDtypeStruct((bp, op), jnp.float32),
        in_specs=[pl.BlockSpec(memory_space=pltpu.MemorySpace.VMEM)] * 6,
        out_specs=pl.BlockSpec(memory_space=pltpu.MemorySpace.VMEM),
        cost_estimate=pl.CostEstimate(
            flops=int(flops),
            transcendentals=int(n_steps * bp * hp),
            bytes_accessed=int(bytes_accessed)),
    )(x_seq2d, wih_p, whh_p, b_p, wfc_p, bfc_p)

    return out_padded[:batch, :n_outputs]


def init_params(key, n_inputs, n_neurons, n_outputs):
    """Deterministic init mirroring PyTorch default U(-1/sqrt(fan), 1/sqrt(fan))."""
    ks = jax.random.split(key, 6)
    k_rnn = 1.0 / jnp.sqrt(n_neurons)
    k_fc = 1.0 / jnp.sqrt(n_neurons)
    w_ih = jax.random.uniform(ks[0], (n_neurons, n_inputs), jnp.float32, -k_rnn, k_rnn)
    w_hh = jax.random.uniform(ks[1], (n_neurons, n_neurons), jnp.float32, -k_rnn, k_rnn)
    b_ih = jax.random.uniform(ks[2], (n_neurons,), jnp.float32, -k_rnn, k_rnn)
    b_hh = jax.random.uniform(ks[3], (n_neurons,), jnp.float32, -k_rnn, k_rnn)
    w_fc = jax.random.uniform(ks[4], (n_outputs, n_neurons), jnp.float32, -k_fc, k_fc)
    b_fc = jax.random.uniform(ks[5], (n_outputs,), jnp.float32, -k_fc, k_fc)
    return (w_ih, w_hh, b_ih, b_hh, w_fc, b_fc)


def reference_forward(x, params):
    """Pure-JAX reference with identical semantics (HIGHEST precision to match kernel)."""
    w_ih, w_hh, b_ih, b_hh, w_fc, b_fc = params
    x_seq = jnp.transpose(x, (1, 0, 2))
    h = jnp.zeros((x.shape[0], w_hh.shape[0]), jnp.float32)

    def step(h, x_t):
        h_new = jnp.tanh(jnp.dot(x_t, w_ih.T, precision=_HI) + b_ih
                         + jnp.dot(h, w_hh.T, precision=_HI) + b_hh)
        return h_new, None

    h_last, _ = jax.lax.scan(step, h, x_seq)
    return jnp.dot(h_last, w_fc.T, precision=_HI) + b_fc


if __name__ == "__main__":
    batch, n_steps, n_inputs = 2, 8, 16
    n_neurons, n_outputs = 32, 10

    key = jax.random.PRNGKey(0)
    k_x, k_p = jax.random.split(key)
    x = jax.random.normal(k_x, (batch, n_steps, n_inputs), jnp.float32)
    params = init_params(k_p, n_inputs, n_neurons, n_outputs)

    out = image_rnn_forward(x, params)
    jax.block_until_ready(out)

    ref = reference_forward(x, params)
    assert out.shape == (batch, n_outputs)
    assert jnp.allclose(out, ref, atol=1e-4, rtol=1e-4), "mismatch vs reference"

    print("KERNEL_OK")
</pallas_src>

<mosaic_0001>
module attributes {stable_mosaic.version = 11 : i64} {
  func.func @rnn_kernel(%arg0: memref<64x16xf32, #tpu.memory_space<vmem>>, %arg1: memref<16x128xf32, #tpu.memory_space<vmem>>, %arg2: memref<128x128xf32, #tpu.memory_space<vmem>>, %arg3: memref<1x128xf32, #tpu.memory_space<vmem>>, %arg4: memref<128x128xf32, #tpu.memory_space<vmem>>, %arg5: memref<1x128xf32, #tpu.memory_space<vmem>>, %arg6: memref<8x128xf32, #tpu.memory_space<vmem>>) attributes {dimension_semantics = [], scalar_prefetch = 0 : i64, scratch_operands = 0 : i64, tpu.core_type = #tpu.core_type<tc>} {
    %c0 = arith.constant 0 : index
    %c0_0 = arith.constant 0 : index
    %0 = vector.load %arg1[%c0, %c0_0] : memref<16x128xf32, #tpu.memory_space<vmem>>, vector<16x128xf32>
    %c0_1 = arith.constant 0 : index
    %c0_2 = arith.constant 0 : index
    %1 = vector.load %arg2[%c0_1, %c0_2] : memref<128x128xf32, #tpu.memory_space<vmem>>, vector<128x128xf32>
    %c0_3 = arith.constant 0 : index
    %c0_4 = arith.constant 0 : index
    %2 = vector.load %arg3[%c0_3, %c0_4] : memref<1x128xf32, #tpu.memory_space<vmem>>, vector<1x128xf32>
    %c0_5 = arith.constant 0 : index
    %c0_6 = arith.constant 0 : index
    %3 = vector.load %arg0[%c0_5, %c0_6] : memref<64x16xf32, #tpu.memory_space<vmem>>, vector<64x16xf32>
    %cst = arith.constant dense<0.000000e+00> : vector<64x128xf32>
    %4 = tpu.matmul %3, %0, %cst {dimension_numbers = #tpu.dot_dimension_numbers<[1], [0], [0], [1], [0, 0, 1, 1], [], []>, precision = #tpu.contract_precision<fp32>} : vector<64x16xf32>, vector<16x128xf32>, vector<64x128xf32> -> vector<64x128xf32>
    %5 = vector.broadcast %2 : vector<1x128xf32> to vector<64x128xf32>
    %6 = arith.addf %4, %5 : vector<64x128xf32>
    %cst_7 = arith.constant 0.000000e+00 : f32
    %7 = vector.broadcast %cst_7 : f32 to vector<8x128xf32>
    %8 = vector.extract_strided_slice %6 {offsets = [0, 0], sizes = [8, 128], strides = [1, 1]} : vector<64x128xf32> to vector<8x128xf32>
    %cst_8 = arith.constant dense<0.000000e+00> : vector<8x128xf32>
    %9 = tpu.matmul %7, %1, %cst_8 {dimension_numbers = #tpu.dot_dimension_numbers<[1], [0], [0], [1], [0, 0, 1, 1], [], []>, precision = #tpu.contract_precision<fp32>} : vector<8x128xf32>, vector<128x128xf32>, vector<8x128xf32> -> vector<8x128xf32>
    %10 = arith.addf %8, %9 : vector<8x128xf32>
    %11 = math.tanh %10 : vector<8x128xf32>
    %12 = vector.extract_strided_slice %6 {offsets = [8, 0], sizes = [8, 128], strides = [1, 1]} : vector<64x128xf32> to vector<8x128xf32>
    %cst_9 = arith.constant dense<0.000000e+00> : vector<8x128xf32>
    %13 = tpu.matmul %11, %1, %cst_9 {dimension_numbers = #tpu.dot_dimension_numbers<[1], [0], [0], [1], [0, 0, 1, 1], [], []>, precision = #tpu.contract_precision<fp32>} : vector<8x128xf32>, vector<128x128xf32>, vector<8x128xf32> -> vector<8x128xf32>
    %14 = arith.addf %12, %13 : vector<8x128xf32>
    %15 = math.tanh %14 : vector<8x128xf32>
    %16 = vector.extract_strided_slice %6 {offsets = [16, 0], sizes = [8, 128], strides = [1, 1]} : vector<64x128xf32> to vector<8x128xf32>
    %cst_10 = arith.constant dense<0.000000e+00> : vector<8x128xf32>
    %17 = tpu.matmul %15, %1, %cst_10 {dimension_numbers = #tpu.dot_dimension_numbers<[1], [0], [0], [1], [0, 0, 1, 1], [], []>, precision = #tpu.contract_precision<fp32>} : vector<8x128xf32>, vector<128x128xf32>, vector<8x128xf32> -> vector<8x128xf32>
    %18 = arith.addf %16, %17 : vector<8x128xf32>
    %19 = math.tanh %18 : vector<8x128xf32>
    %20 = vector.extract_strided_slice %6 {offsets = [24, 0], sizes = [8, 128], strides = [1, 1]} : vector<64x128xf32> to vector<8x128xf32>
    %cst_11 = arith.constant dense<0.000000e+00> : vector<8x128xf32>
    %21 = tpu.matmul %19, %1, %cst_11 {dimension_numbers = #tpu.dot_dimension_numbers<[1], [0], [0], [1], [0, 0, 1, 1], [], []>, precision = #tpu.contract_precision<fp32>} : vector<8x128xf32>, vector<128x128xf32>, vector<8x128xf32> -> vector<8x128xf32>
    %22 = arith.addf %20, %21 : vector<8x128xf32>
    %23 = math.tanh %22 : vector<8x128xf32>
    %24 = vector.extract_strided_slice %6 {offsets = [32, 0], sizes = [8, 128], strides = [1, 1]} : vector<64x128xf32> to vector<8x128xf32>
    %cst_12 = arith.constant dense<0.000000e+00> : vector<8x128xf32>
    %25 = tpu.matmul %23, %1, %cst_12 {dimension_numbers = #tpu.dot_dimension_numbers<[1], [0], [0], [1], [0, 0, 1, 1], [], []>, precision = #tpu.contract_precision<fp32>} : vector<8x128xf32>, vector<128x128xf32>, vector<8x128xf32> -> vector<8x128xf32>
    %26 = arith.addf %24, %25 : vector<8x128xf32>
    %27 = math.tanh %26 : vector<8x128xf32>
    %28 = vector.extract_strided_slice %6 {offsets = [40, 0], sizes = [8, 128], strides = [1, 1]} : vector<64x128xf32> to vector<8x128xf32>
    %cst_13 = arith.constant dense<0.000000e+00> : vector<8x128xf32>
    %29 = tpu.matmul %27, %1, %cst_13 {dimension_numbers = #tpu.dot_dimension_numbers<[1], [0], [0], [1], [0, 0, 1, 1], [], []>, precision = #tpu.contract_precision<fp32>} : vector<8x128xf32>, vector<128x128xf32>, vector<8x128xf32> -> vector<8x128xf32>
    %30 = arith.addf %28, %29 : vector<8x128xf32>
    %31 = math.tanh %30 : vector<8x128xf32>
    %32 = vector.extract_strided_slice %6 {offsets = [48, 0], sizes = [8, 128], strides = [1, 1]} : vector<64x128xf32> to vector<8x128xf32>
    %cst_14 = arith.constant dense<0.000000e+00> : vector<8x128xf32>
    %33 = tpu.matmul %31, %1, %cst_14 {dimension_numbers = #tpu.dot_dimension_numbers<[1], [0], [0], [1], [0, 0, 1, 1], [], []>, precision = #tpu.contract_precision<fp32>} : vector<8x128xf32>, vector<128x128xf32>, vector<8x128xf32> -> vector<8x128xf32>
    %34 = arith.addf %32, %33 : vector<8x128xf32>
    %35 = math.tanh %34 : vector<8x128xf32>
    %36 = vector.extract_strided_slice %6 {offsets = [56, 0], sizes = [8, 128], strides = [1, 1]} : vector<64x128xf32> to vector<8x128xf32>
    %cst_15 = arith.constant dense<0.000000e+00> : vector<8x128xf32>
    %37 = tpu.matmul %35, %1, %cst_15 {dimension_numbers = #tpu.dot_dimension_numbers<[1], [0], [0], [1], [0, 0, 1, 1], [], []>, precision = #tpu.contract_precision<fp32>} : vector<8x128xf32>, vector<128x128xf32>, vector<8x128xf32> -> vector<8x128xf32>
    %38 = arith.addf %36, %37 : vector<8x128xf32>
    %39 = math.tanh %38 : vector<8x128xf32>
    %c0_16 = arith.constant 0 : index
    %c0_17 = arith.constant 0 : index
    %40 = vector.load %arg4[%c0_16, %c0_17] : memref<128x128xf32, #tpu.memory_space<vmem>>, vector<128x128xf32>
    %cst_18 = arith.constant dense<0.000000e+00> : vector<8x128xf32>
    %41 = tpu.matmul %39, %40, %cst_18 {dimension_numbers = #tpu.dot_dimension_numbers<[1], [0], [0], [1], [0, 0, 1, 1], [], []>, precision = #tpu.contract_precision<fp32>} : vector<8x128xf32>, vector<128x128xf32>, vector<8x128xf32> -> vector<8x128xf32>
    %c0_19 = arith.constant 0 : index
    %c0_20 = arith.constant 0 : index
    %42 = vector.load %arg5[%c0_19, %c0_20] : memref<1x128xf32, #tpu.memory_space<vmem>>, vector<1x128xf32>
    %43 = vector.broadcast %42 : vector<1x128xf32> to vector<8x128xf32>
    %44 = arith.addf %41, %43 : vector<8x128xf32>
    %c0_21 = arith.constant 0 : index
    %c0_22 = arith.constant 0 : index
    %45 = vector.load %arg6[%c0_21, %c0_22] : memref<8x128xf32, #tpu.memory_space<vmem>>, vector<8x128xf32>
    tpu.vector_store %arg6[%c0_21, %c0_22], %44 {strides = array<i32>} : memref<8x128xf32, #tpu.memory_space<vmem>>, vector<8x128xf32>,
    return
  }
}

</mosaic_0001>

<bundles_post_ra>
// kernel: tpu_custom_call.1
= control target key start
LH: loop header
LB: loop body
LE: loop exit
PB: predicated region body
PF: predicated region fallthrough
CT: control target
= control target key end

     0   :  { %11 = vsyncpa [#allocation3], 0  ;;  %s5132_s0 = inlined_call_operand.vmem [shape: f32[64,16], index: 0, kind: input, shape index: {}]   ;;  %s5133_s1 = inlined_call_operand.vmem [shape: f32[16,128], index: 1, kind: input, shape index: {}]   ;;  %s5134_s2 = inlined_call_operand.hbm [shape: f32[128,128], index: 2, kind: input, shape index: {}]   ;;  %s5135_s3 = inlined_call_operand.vmem [shape: f32[1,128], index: 3, kind: input, shape index: {}]   ;;  %s5136_s4 = inlined_call_operand.hbm [shape: f32[128,128], index: 4, kind: input, shape index: {}]   ;;  %s5137_s5 = inlined_call_operand.vmem [shape: f32[1,128], index: 5, kind: input, shape index: {}]   ;;  %s5138_s6 = inlined_call_operand.hbm [shape: f32[8,128], index: 6, kind: output, shape index: {}]  }
   0x1   :  { %12 = vsyncpa [#allocation6], 0 }
   0x2   :  { %13 = vsyncpa [#allocation4], 0  ;;  %s22_s23 = sshll.u32 %s5134_s2, 4  ;;  %s3704_s24 = smov [#allocation2]   ;;  %s23_s23 = int_to_ptr.hbm [resolvable:$true] %s22_s23 }
   0x3   :  { %s24_s25 = sshll.u32 %s3704_s24, 4  ;;  %s37_s28 = sshll.u32 %s5136_s4, 4  ;;  %s25_s25 = int_to_ptr.vmem [resolvable:$true] %s24_s25  ;;  %s38_s28 = int_to_ptr.hbm [resolvable:$true] %s37_s28 }
   0x4   :  { %s3705_s29 = smov 128   ;;  %s3706_s30 = smov 8  }
   0x5   :  { %30 = dma.hbm_to_vmem [thread:$0]  %s23_s23, 2048, %s25_s25, [#allocation3], %s3705_s29, %s3705_s29, %s3706_s30  }
   0x6   :  { %s3707_s7 = smov [#allocation5]  }
   0x7   :  { %s39_s8 = sshll.u32 %s3707_s7, 4  ;;  %s40_s8 = int_to_ptr.vmem [resolvable:$true] %s39_s8 }
   0x8   :  { %45 = dma.hbm_to_vmem [thread:$0]  %s38_s28, 2048, %s40_s8, [#allocation6], %s3705_s29, %s3705_s29, %s3706_s30  }
   0x9   :  { %3698 = dma.done.wait [#allocation3], 2048  }
   0xa   :  { %3699 = vsyncadd [#allocation3], 4294965248 }
   0xb   :  { %3700 = dma.done.wait [#allocation6], 2048  }
   0xc   :  { %3701 = vsyncadd [#allocation6], 4294965248  ;;  %vm86_vm0 = vcmask 130048   ;;  %v57_v0 = vld [vmem:[%s5133_s1 + $0x8] sm:$0xff]  ;;  %v56_v1 = vld [vmem:[%s5133_s1] sm:$0xff]  ;;  %s3709_s28 = smov [#allocation7]  }
   0xd   :  { %v75_v2 = vld [vmem:[%s5132_s0] sm:$0xff]  ;;  %v3760_v3 = vand.u32 4294901760, %v57_v0  ;;  %v3762_v4 = vand.u32 4294901760, %v56_v1  ;;  %v81_v6 = vld [vmem:[%s5132_s0 + $0x30] sm:$0xff]  ;;  %v76_v7 = vld [vmem:[%s5132_s0 + $0x8] sm:$0xff]  ;;  %s3585_s29 = sshll.u32 %s3709_s28, 4  ;;  %s3586_s29 = int_to_ptr.vmem [resolvable:$true] %s3585_s29 }
   0xe   :  { %v88_v5 = vsel %vm86_vm0, %v75_v2, 0  ;;  %v82_v8 = vld [vmem:[%s5132_s0 + $0x38] sm:$0xff]  ;;  %v106_v10 = vsel %vm86_vm0, %v81_v6, 0  ;;  %v91_v11 = vsel %vm86_vm0, %v76_v7, 0  ;;  %v77_v13 = vld [vmem:[%s5132_s0 + $0x10] sm:$0xff]  ;;  %v71_v41 = vld [vmem:[#allocation2 + $0x68] sm:$0xff] }
   0xf   :  { %v3774_v9 = vand.u32 4294901760, %v88_v5  ;;  %v109_v12 = vsel %vm86_vm0, %v82_v8, 0  ;;  %126 = vmatpush.msra.mxu0 %v3760_v3  ;;  %3598 = vmatpush.msra.mxu2 %v3760_v3  ;;  %v209_v14 = vsub.f32 %v57_v0, %v3760_v3  ;;  %v3785_v15 = vand.u32 4294901760, %v106_v10  ;;  %v78_v34 = vld [vmem:[%s5132_s0 + $0x18] sm:$0xff]  ;;  %v72_v40 = vld [vmem:[#allocation2 + $0x70] sm:$0xff]  ;;  %v70_v48 = vld [vmem:[#allocation2 + $0x60] sm:$0xff] }
  0x10   :  { %v215_v16 = vsub.f32 %v56_v1, %v3762_v4  ;;  %v3788_v17 = vand.u32 4294901760, %v91_v11  ;;  %v3793_v19 = vand.u32 4294901760, %v109_v12  ;;  %v94_v20 = vsel %vm86_vm0, %v77_v13, 0  ;;  %v73_v35 = vld [vmem:[#allocation2 + $0x78] sm:$0xff]  ;;  %v68_v62 = vld [vmem:[#allocation2 + $0x50] sm:$0xff]  ;;  %v79_v63 = vld [vmem:[%s5132_s0 + $0x20] sm:$0xff] }
  0x11   :  { %5233 = vst [vmem:[#allocation11_spill] sm:$0xff] %v3785_v15  ;;  %v3791_v18 = vsub.f32 %v88_v5, %v3774_v9  ;;  %128 = vmatpush.msra.mxu0 %v3762_v4  ;;  %3599 = vmatpush.msra.mxu2 %v3762_v4  ;;  %v210_v21 = vand.u32 4294901760, %v209_v14  ;;  %v3799_v22 = vsub.f32 %v106_v10, %v3785_v15  ;;  %v3814_v33 = vand.u32 4294901760, %v94_v20  ;;  %v69_v53 = vld [vmem:[#allocation2 + $0x58] sm:$0xff]  ;;  %v67_v8 = vld [vmem:[#allocation2 + $0x48] sm:$0xff]  ;;  %s3587_s8 = sshll.u32 %s5138_s6, 4  ;;  %s3588_s8 = int_to_ptr.hbm [resolvable:$true] %s3587_s8 }
  0x12   :  { %5234 = vst [vmem:[#allocation12_spill] sm:$0xff] %v3793_v19  ;;  %v216_v23 = vand.u32 4294901760, %v215_v16  ;;  %v3802_v24 = vsub.f32 %v91_v11, %v3788_v17  ;;  %v3806_v26 = vsub.f32 %v109_v12, %v3793_v19  ;;  %v97_v43 = vsel %vm86_vm0, %v78_v34, 0 }
  0x13   :  { %v131_v25 = vand.u32 4294901760, %v3791_v18  ;;  %269 = vmatpush.msrb.mxu2 %v209_v14  ;;  %v211_v27 = vsub.f32 %v209_v14, %v210_v21  ;;  %v5140_v28 = vand.u32 4294901760, %v3799_v22  ;;  %398 = vmatpush.msrb.mxu0 %v210_v21  ;;  %v3823_v44 = vand.u32 4294901760, %v73_v35  ;;  %v66_v21 = vld [vmem:[#allocation2 + $0x40] sm:$0xff] }
  0x14   :  { %v217_v29 = vsub.f32 %v215_v16, %v216_v23  ;;  %v5143_v31 = vand.u32 4294901760, %v3802_v24  ;;  %v5139_v32 = vand.u32 4294901760, %v3806_v26  ;;  %v3832_v47 = vsub.f32 %v94_v20, %v3814_v33 }
  0x15   :  { %v132_v30 = vsub.f32 %v3791_v18, %v131_v25  ;;  %272 = vmatpush.msrb.mxu2 %v215_v16  ;;  %v212_v36 = vand.u32 4294901760, %v211_v27  ;;  %v180_v37 = vsub.f32 %v3799_v22, %v5140_v28  ;;  %402 = vmatpush.msrb.mxu0 %v216_v23  ;;  %v3835_v49 = vsub.f32 %v73_v35, %v3823_v44 }
  0x16   :  { %v218_v38 = vand.u32 4294901760, %v217_v29  ;;  %v140_v45 = vsub.f32 %v3802_v24, %v5143_v31  ;;  %v188_v46 = vsub.f32 %v3806_v26, %v5139_v32  ;;  %v3837_v50 = vand.u32 4294901760, %v72_v40 }
  0x17   :  { %v133_v39 = vand.u32 4294901760, %v132_v30  ;;  %213 = vmatpush.msra.mxu1 %v212_v36  ;;  %3600 = vmatpush.msra.mxu3 %v212_v36  ;;  %v181_v42 = vand.u32 4294901760, %v180_v37  ;;  %v3839_v51 = vand.u32 4294901760, %v71_v41  ;;  %v3842_v52 = vand.u32 4294901760, %v97_v43  ;;  %v65_v37 = vld [vmem:[#allocation2 + $0x38] sm:$0xff] }
  0x18   :  { %v3847_v54 = vand.u32 4294901760, %v3835_v49  ;;  %v3850_v55 = vsub.f32 %v72_v40, %v3837_v50  ;;  %v3852_v56 = vand.u32 4294901760, %v70_v48  ;;  %v141_v58 = vand.u32 4294901760, %v140_v45 }
  0x19   :  { %134 = vmatmul.f32.vlgmr.msra.gmra.mxu0 %v133_v39  ;;  %182 = vmatmul.f32.vlgmr.msra.gmra.mxu2 %v181_v42  ;;  %v3855_v57 = vsub.f32 %v71_v41, %v3839_v51  ;;  %v189_v59 = vand.u32 4294901760, %v188_v46  ;;  %v5142_v60 = vand.u32 4294901760, %v3832_v47  ;;  %v3860_v61 = vand.u32 4294901760, %v69_v53 }
  0x1a   :  { %219 = vmatpush.msra.mxu1 %v218_v38  ;;  %3601 = vmatpush.msra.mxu3 %v218_v38  ;;  %5235 = vst [vmem:[#allocation13_spill] sm:$0xff] %v3847_v54  ;;  %v526_v0 = vsub.f32 %v3835_v49, %v3847_v54  ;;  %v3869_v1 = vand.u32 4294901760, %v3850_v55  ;;  %v3880_v5 = vsub.f32 %v97_v43, %v3842_v52  ;;  %v3883_v6 = vand.u32 4294901760, %v68_v62 }
  0x1b   :  { %221 = vmatmul.f32.vlgmr.msra.gmra.mxu1 %v3774_v9  ;;  %245 = vmatmul.f32.vlgmr.msra.gmra.mxu3 %v3785_v15  ;;  %v3872_v2 = vand.u32 4294901760, %v3855_v57  ;;  %v3886_v7 = vsub.f32 %v69_v53, %v3860_v61  ;;  %v148_v13 = vsub.f32 %v3832_v47, %v5142_v60  ;;  %v100_v14 = vsel %vm86_vm0, %v79_v63, 0  ;;  %v80_v53 = vld [vmem:[%s5132_s0 + $0x28] sm:$0xff] }
  0x1c   :  { %451 = vmatpush.msrb.mxu1 %v3760_v3  ;;  %329 = vmatpush.msrb.mxu3 %v3760_v3  ;;  %5236 = vst [vmem:[#allocation14_spill] sm:$0xff] %v3869_v1  ;;  %v3875_v3 = vsub.f32 %v70_v48, %v3852_v56  ;;  %v3888_v10 = vand.u32 4294901760, %v526_v0  ;;  %v532_v11 = vsub.f32 %v3850_v55, %v3869_v1  ;;  %v3907_v20 = vand.u32 4294901760, %v67_v8  ;;  %v64_v48 = vld [vmem:[#allocation2 + $0x30] sm:$0xff] }
  0x1d   :  { %488 = vmatpush.msra.mxu2 %v3823_v44  ;;  %5237 = vst [vmem:[#allocation15_spill] sm:$0xff] %v3872_v2  ;;  %714 = vmatpush.msra.mxu0 %v3847_v54  ;;  %v538_v12 = vsub.f32 %v3855_v57, %v3872_v2  ;;  %v3905_v16 = vand.u32 4294901760, %v3886_v7  ;;  %v3915_v29 = vsub.f32 %v68_v62, %v3883_v6  ;;  %v3923_v35 = vand.u32 4294901760, %v66_v21 }
  0x1e   :  { %453 = vmatpush.msrb.mxu1 %v3762_v4  ;;  %331 = vmatpush.msrb.mxu3 %v3762_v4  ;;  %5238 = vst [vmem:[#allocation16_spill] sm:$0xff] %v3888_v10  ;;  %v3895_v4 = vand.u32 4294901760, %v3875_v3  ;;  %v3910_v23 = vand.u32 4294901760, %v532_v11  ;;  %v3926_v36 = vsub.f32 %v67_v8, %v3907_v20  ;;  %v5141_v38 = vand.u32 4294901760, %v3880_v5  ;;  %v63_v11 = vld [vmem:[#allocation2 + $0x28] sm:$0xff] }
  0x1f   :  { %490 = vmatpush.msra.mxu2 %v3837_v50  ;;  %718 = vmatpush.msra.mxu0 %v3869_v1  ;;  %5240 = vst [vmem:[#allocation18_spill] sm:$0xff] %v3905_v16  ;;  %v3919_v30 = vand.u32 4294901760, %v538_v12  ;;  %v550_v34 = vsub.f32 %v3886_v7, %v3905_v16  ;;  %v3930_v39 = vand.u32 4294901760, %v100_v14  ;;  %v3933_v40 = vand.u32 4294901760, %v3915_v29  ;;  %v59_v1 = vld [vmem:[#allocation2 + $0x8] sm:$0xff] }
  0x20   :  { %5239 = vst [vmem:[#allocation17_spill] sm:$0xff] %v3895_v4  ;;  %780 = vmatpush.msra.mxu1 %v3823_v44  ;;  %528 = vmatpush.msra.mxu3 %v3888_v10  ;;  %v544_v27 = vsub.f32 %v3875_v3, %v3895_v4  ;;  %v3935_v41 = vand.u32 4294901760, %v65_v37  ;;  %v149_v42 = vand.u32 4294901760, %v148_v13  ;;  %v3943_v45 = vand.u32 4294901760, %v3926_v36 }
  0x21   :  { %142 = vmatmul.f32.gmra.mxu0 %v141_v58  ;;  %492 = vmatpush.msra.mxu2 %v3839_v51  ;;  %5241 = vst [vmem:[#allocation19_spill] sm:$0xff] %v3910_v23  ;;  %v3946_v46 = vsub.f32 %v66_v21, %v3923_v35  ;;  %v556_v58 = vsub.f32 %v3915_v29, %v3933_v40  ;;  %v3962_v63 = vand.u32 4294901760, %v550_v34  ;;  %v3975_v21 = vand.u32 4294901760, %v63_v11 }
  0x22   :  { %190 = vmatmul.f32.gmra.mxu2 %v189_v59  ;;  %5242 = vst [vmem:[#allocation20_spill] sm:$0xff] %v3919_v30  ;;  %782 = vmatpush.msra.mxu1 %v3837_v50  ;;  %v3940_v43 = vand.u32 4294901760, %v544_v27  ;;  %v3953_v59 = vand.u32 4294901760, %v64_v48  ;;  %v3956_v62 = vsub.f32 %v65_v37, %v3935_v41  ;;  %v562_v0 = vsub.f32 %v3926_v36, %v3943_v45 }
  0x23   :  { %225 = vmatmul.f32.gmra.mxu1 %v3788_v17  ;;  %494 = vmatpush.msra.mxu2 %v3852_v56  ;;  %5243 = vst [vmem:[#allocation21_spill] sm:$0xff] %v3933_v40  ;;  %v3967_v8 = vand.u32 4294901760, %v3946_v46  ;;  %v3970_v12 = vsub.f32 %v100_v14, %v3930_v39  ;;  %v156_v34 = vsub.f32 %v3880_v5, %v5141_v38  ;;  %v103_v14 = vsel %vm86_vm0, %v80_v53, 0  ;;  %v61_v38 = vld [vmem:[#allocation2 + $0x18] sm:$0xff] }
  0x24   :  { %249 = vmatmul.f32.gmra.mxu3 %v3793_v19  ;;  %5244 = vst [vmem:[#allocation22_spill] sm:$0xff] %v3940_v43  ;;  %722 = vmatpush.msra.mxu0 %v3872_v2  ;;  %v3973_v13 = vand.u32 4294901760, %v3956_v62  ;;  %v3978_v27 = vsub.f32 %v64_v48, %v3953_v59  ;;  %v3987_v37 = vand.u32 4294901760, %v556_v58  ;;  %v62_v48 = vld [vmem:[#allocation2 + $0x20] sm:$0xff]  ;;  %v4000_v53 = vand.u32 4294901760, %v562_v0 }
  0x25   :  { %534 = vmatpush.msra.mxu3 %v3910_v23  ;;  %496 = vmatpush.msra.mxu2 %v3860_v61  ;;  %5245 = vst [vmem:[#allocation23_spill] sm:$0xff] %v3943_v45  ;;  %v568_v32 = vsub.f32 %v3946_v46, %v3967_v8  ;;  %v3992_v28 = vand.u32 4294901760, %v62_v48  ;;  %v4008_v31 = vand.u32 4294901760, %v103_v14  ;;  %v157_v0 = vand.u32 4294901760, %v156_v34 }
  0x26   :  { %784 = vmatpush.msra.mxu1 %v3839_v51  ;;  %5246 = vst [vmem:[#allocation24_spill] sm:$0xff] %v3962_v63  ;;  %726 = vmatpush.msra.mxu0 %v3895_v4  ;;  %v4003_v58 = vand.u32 4294901760, %v3978_v27 }
  0x27   :  { %540 = vmatpush.msra.mxu3 %v3919_v30  ;;  %498 = vmatpush.msra.mxu2 %v3883_v6  ;;  %5247 = vst [vmem:[#allocation25_spill] sm:$0xff] %v3967_v8  ;;  %v4016_v4 = vand.u32 4294901760, %v568_v32  ;;  %v4040_v19 = vsub.f32 %v103_v14, %v4008_v31 }
  0x28   :  { %5248 = vst [vmem:[#allocation26_spill] sm:$0xff] %v3973_v13  ;;  %786 = vmatpush.msra.mxu1 %v3852_v56  ;;  %730 = vmatpush.msra.mxu0 %v3905_v16  ;;  %v4013_v16 = vand.u32 4294901760, %v61_v38  ;;  %v580_v32 = vsub.f32 %v3978_v27, %v4003_v58 }
  0x29   :  { %150 = vmatmul.f32.gmra.mxu0 %v149_v42  ;;  %546 = vmatpush.msra.mxu3 %v3940_v43  ;;  %5249 = vst [vmem:[#allocation27_spill] sm:$0xff] %v3987_v37  ;;  %v3995_v42 = vsub.f32 %v63_v11, %v3975_v21  ;;  %v574_v11 = vsub.f32 %v3956_v62, %v3973_v13 }
  0x2a   :  { %275 = vmatmul.f32.vlgmr.msrb.gmra.mxu2 %v3791_v18  ;;  %5251 = vst [vmem:[#allocation29_spill] sm:$0xff] %v4000_v53  ;;  %v4022_v18 = vsub.f32 %v62_v48, %v3992_v28  ;;  %788 = vmatpush.msra.mxu1 %v3860_v61  ;;  %v4033_v34 = vsub.f32 %v61_v38, %v4013_v16  ;;  %v5256_v48 = vand.u32 4294901760, %v3970_v12 }
  0x2b   :  { %5250 = vst [vmem:[#allocation28_spill] sm:$0xff] %v3995_v42  ;;  %229 = vmatmul.f32.gmra.mxu1 %v3814_v33  ;;  %552 = vmatpush.msra.mxu3 %v3962_v63  ;;  %v4019_v2 = vand.u32 4294901760, %v3995_v42  ;;  %v5176_v63 = vand.u32 4294901760, %v4040_v19 }
  0x2c   :  { %5252 = vst [vmem:[#allocation30_spill] sm:$0xff] %v4003_v58  ;;  %335 = vmatmul.f32.vlgmr.msrb.gmra.mxu3 %v131_v25  ;;  %500 = vmatpush.msra.mxu2 %v3907_v20  ;;  %v60_v25 = vld [vmem:[#allocation2 + $0x10] sm:$0xff]  ;;  %v164_v54 = vsub.f32 %v3970_v12, %v5256_v48  ;;  %v58_v48 = vld [vmem:[#allocation2] sm:$0xff] }
  0x2d   :  { %558 = vmatpush.msra.mxu3 %v3987_v37  ;;  %5253 = vst [vmem:[#allocation31_spill] sm:$0xff] %v4016_v4  ;;  %v4026_v60 = vand.u32 4294901760, %v60_v25  ;;  %734 = vmatpush.msra.mxu0 %v3933_v40  ;;  %v4043_v40 = vand.u32 4294901760, %v574_v11  ;;  %v586_v38 = vsub.f32 %v3995_v42, %v4019_v2  ;;  %v4052_v37 = vand.u32 4294901760, %v59_v1 }
  0x2e   :  { %5254 = vst [vmem:[#allocation32_spill] sm:$0xff] %v4022_v18  ;;  %502 = vmatpush.msra.mxu2 %v3923_v35  ;;  %790 = vmatpush.msra.mxu1 %v3883_v6  ;;  %v4061_v11 = vand.u32 4294901760, %v580_v32 }
  0x2f   :  { %564 = vmatpush.msra.mxu3 %v4000_v53  ;;  %5255 = vst [vmem:[#allocation33_spill] sm:$0xff] %v4033_v34  ;;  %738 = vmatpush.msra.mxu0 %v3943_v45  ;;  %v4050_v53 = vand.u32 4294901760, %v4022_v18  ;;  %v4055_v14 = vsub.f32 %v60_v25, %v4026_v60  ;;  %v4066_v45 = vand.u32 4294901760, %v58_v48  ;;  %v165_v25 = vand.u32 4294901760, %v164_v54 }
  0x30   :  { %504 = vmatpush.msra.mxu2 %v3935_v41  ;;  %5257 = vst [vmem:[#allocation34_spill] sm:$0xff] %v4043_v40  ;;  %792 = vmatpush.msra.mxu1 %v3907_v20  ;;  %v4074_v15 = vand.u32 4294901760, %v586_v38 }
  0x31   :  { %158 = vmatmul.f32.gmra.mxu0 %v157_v0  ;;  %570 = vmatpush.msra.mxu3 %v4016_v4  ;;  %5258 = vst [vmem:[#allocation35_spill] sm:$0xff] %v4050_v53  ;;  %v4064_v0 = vand.u32 4294901760, %v4033_v34  ;;  %v5264_v4 = vand.u32 4294901760, %v3802_v24  ;;  %v592_v32 = vsub.f32 %v4022_v18, %v4050_v53  ;;  %v4079_v43 = vand.u32 4294901760, %v4055_v14 }
  0x32   :  { %5259 = vst [vmem:[#allocation36_spill] sm:$0xff] %v4052_v37  ;;  %280 = vmatmul.f32.gmra.mxu2 %v3802_v24  ;;  %742 = vmatpush.msra.mxu0 %v3967_v8  ;;  %v4082_v24 = vsub.f32 %v59_v1, %v4052_v37  ;;  %v172_v1 = vsub.f32 %v4040_v19, %v5176_v63 }
  0x33   :  { %5260 = vst [vmem:[#allocation37_spill] sm:$0xff] %v4055_v14  ;;  %233 = vmatmul.f32.gmra.mxu1 %v3842_v52  ;;  %506 = vmatpush.msra.mxu2 %v3953_v59  ;;  %v598_v54 = vsub.f32 %v4033_v34, %v4064_v0  ;;  %v4099_v38 = vand.u32 4294901760, %v592_v32  ;;  %v5273_v32 = vand.u32 4294901760, %v3832_v47 }
  0x34   :  { %5261 = vst [vmem:[#allocation38_spill] sm:$0xff] %v4061_v11  ;;  %341 = vmatmul.f32.gmra.mxu3 %v5264_v4  ;;  %794 = vmatpush.msra.mxu1 %v3923_v35  ;;  %v4091_v4 = vsub.f32 %v58_v48, %v4066_v45  ;;  %v4104_v8 = vand.u32 4294901760, %v4082_v24  ;;  %v173_v63 = vand.u32 4294901760, %v172_v1  ;;  %v5277_v1 = vand.u32 4294901760, %v3880_v5 }
  0x35   :  { %5262 = vst [vmem:[#allocation39_spill] sm:$0xff] %v4064_v0  ;;  %576 = vmatpush.msra.mxu3 %v4043_v40  ;;  %508 = vmatpush.msra.mxu2 %v3975_v21  ;;  %v4110_v48 = vand.u32 4294901760, %v598_v54 }
  0x36   :  { %5263 = vst [vmem:[#allocation40_spill] sm:$0xff] %v4066_v45  ;;  %746 = vmatpush.msra.mxu0 %v3973_v13  ;;  %796 = vmatpush.msra.mxu1 %v3935_v41  ;;  %v604_v13 = vsub.f32 %v4055_v14, %v4079_v43 }
  0x37   :  { %5265 = vst [vmem:[#allocation41_spill] sm:$0xff] %v4074_v15  ;;  %582 = vmatpush.msra.mxu3 %v4061_v11  ;;  %510 = vmatpush.msra.mxu2 %v3992_v28 }
  0x38   :  { %5266 = vst [vmem:[#allocation42_spill] sm:$0xff] %v4079_v43  ;;  %750 = vmatpush.msra.mxu0 %v4003_v58  ;;  %798 = vmatpush.msra.mxu1 %v3953_v59  ;;  %v4120_v58 = vand.u32 4294901760, %v604_v13 }
  0x39   :  { %5267 = vst [vmem:[#allocation43_spill] sm:$0xff] %v4082_v24  ;;  %166 = vmatmul.f32.gmra.mxu0 %v165_v25  ;;  %588 = vmatpush.msra.mxu3 %v4074_v15  ;;  %v4113_v25 = vand.u32 4294901760, %v4091_v4  ;;  %v610_v15 = vsub.f32 %v4082_v24, %v4104_v8 }
  0x3a   :  { %5268 = vst [vmem:[#allocation44_spill] sm:$0xff] %v4091_v4  ;;  %285 = vmatmul.f32.gmra.mxu2 %v3832_v47  ;;  %754 = vmatpush.msra.mxu0 %v4019_v2 }
  0x3b   :  { %5269 = vst [vmem:[#allocation45_spill] sm:$0xff] %v4099_v38  ;;  %237 = vmatmul.f32.gmra.mxu1 %v3930_v39  ;;  %512 = vmatpush.msra.mxu2 %v4013_v16  ;;  %v616_v47 = vsub.f32 %v4091_v4, %v4113_v25  ;;  %v4133_v13 = vand.u32 4294901760, %v610_v15  ;;  %v5278_v15 = vand.u32 4294901760, %v3970_v12 }
  0x3c   :  { %5270 = vst [vmem:[#allocation46_spill] sm:$0xff] %v4104_v8  ;;  %347 = vmatmul.f32.gmra.mxu3 %v5273_v32  ;;  %800 = vmatpush.msra.mxu1 %v3975_v21  ;;  %v5290_v32 = vld [vmem:[#allocation13_spill] sm:$0xff] }
  0x3d   :  { %5271 = vst [vmem:[#allocation47_spill] sm:$0xff] %v4110_v48  ;;  %594 = vmatpush.msra.mxu3 %v4099_v38  ;;  %514 = vmatpush.msra.mxu2 %v4026_v60  ;;  %v4139_v54 = vand.u32 4294901760, %v616_v47  ;;  %v5291_v47 = vld [vmem:[#allocation14_spill] sm:$0xff] }
  0x3e   :  { %5272 = vst [vmem:[#allocation48_spill] sm:$0xff] %v4113_v25  ;;  %758 = vmatpush.msra.mxu0 %v4050_v53  ;;  %802 = vmatpush.msra.mxu1 %v3992_v28 }
  0x3f   :  { %5274 = vst [vmem:[#allocation49_spill] sm:$0xff] %v4120_v58  ;;  %600 = vmatpush.msra.mxu3 %v4110_v48  ;;  %516 = vmatpush.msra.mxu2 %v4052_v37 }
  0x40   :  { %762 = vmatpush.msra.mxu0 %v4064_v0  ;;  %5275 = vst [vmem:[#allocation50_spill] sm:$0xff] %v4133_v13  ;;  %804 = vmatpush.msra.mxu1 %v4013_v16 }
  0x41   :  { %174 = vmatmul.f32.gmra.mxu0 %v173_v63  ;;  %606 = vmatpush.msra.mxu3 %v4120_v58  ;;  %5276 = vst [vmem:[#allocation51_spill] sm:$0xff] %v4139_v54  ;;  %v5288_v63 = vld [vmem:[#allocation12_spill] sm:$0xff] }
  0x42   :  { %290 = vmatmul.f32.gmra.mxu2 %v3880_v5  ;;  %766 = vmatpush.msra.mxu0 %v4079_v43  ;;  %v5286_v5 = vld [vmem:[#allocation29_spill] sm:$0xff] }
  0x43   :  { %241 = vmatmul.f32.gmra.mxu1 %v4008_v31  ;;  %518 = vmatpush.msra.mxu2 %v4066_v45 }
  0x44   :  { %353 = vmatmul.f32.gmra.mxu3 %v5277_v1  ;;  %806 = vmatpush.msra.mxu1 %v4026_v60  ;;  %v5292_v1 = vld [vmem:[#allocation15_spill] sm:$0xff] }
  0x45   :  { %625 = vmatpush.msrb.mxu2 %v3835_v49  ;;  %612 = vmatpush.msra.mxu3 %v4133_v13 }
  0x46   :  { %770 = vmatpush.msra.mxu0 %v4104_v8  ;;  %808 = vmatpush.msra.mxu1 %v4052_v37 }
  0x47   :  { %628 = vmatpush.msrb.mxu2 %v3850_v55  ;;  %618 = vmatpush.msra.mxu3 %v4139_v54 }
  0x48   :  { %774 = vmatpush.msra.mxu0 %v4113_v25  ;;  %810 = vmatpush.msra.mxu1 %v4066_v45 }
  0x49   :  { %676 = vmatpush.msrb.mxu3 %v3823_v44  ;;  %631 = vmatpush.msrb.mxu2 %v3855_v57 }
  0x4a   :  { %404 = vmatmul.f32.vlgmr.msrb.gmra.mxu0 %v3774_v9  ;;  %295 = vmatmul.f32.gmra.mxu2 %v3970_v12  ;;  %v5289_v12 = vld [vmem:[#allocation41_spill] sm:$0xff] }
  0x4b   :  { %678 = vmatpush.msrb.mxu3 %v3837_v50  ;;  %455 = vmatmul.f32.vlgmr.msrb.gmra.mxu1 %v3774_v9  ;;  %v5279_v9 = vand.u32 4294901760, %v4040_v19 }
  0x4c   :  { %634 = vmatpush.msrb.mxu2 %v3875_v3  ;;  %359 = vmatmul.f32.gmra.mxu3 %v5278_v15  ;;  %v5293_v15 = vld [vmem:[#allocation17_spill] sm:$0xff] }
  0x4d   :  { %680 = vmatpush.msrb.mxu3 %v3839_v51  ;;  %961 = vmatpush.msrb.mxu0 %v3835_v49 }
  0x4e   :  { %637 = vmatpush.msrb.mxu2 %v3886_v7  ;;  %1014 = vmatpush.msrb.mxu1 %v3823_v44 }
  0x4f   :  { %682 = vmatpush.msrb.mxu3 %v3852_v56  ;;  %964 = vmatpush.msrb.mxu0 %v3850_v55 }
  0x50   :  { %640 = vmatpush.msrb.mxu2 %v3915_v29  ;;  %1016 = vmatpush.msrb.mxu1 %v3837_v50 }
  0x51   :  { %684 = vmatpush.msrb.mxu3 %v3860_v61  ;;  %967 = vmatpush.msrb.mxu0 %v3855_v57 }
  0x52   :  { %408 = vmatmul.f32.gmra.mxu0 %v3788_v17  ;;  %300 = vmatmul.f32.gmra.mxu2 %v4040_v19  ;;  %v5281_v19 = vand.u32 4294901760, %v3806_v26 }
  0x53   :  { %459 = vmatmul.f32.gmra.mxu1 %v3788_v17  ;;  %643 = vmatpush.msrb.mxu2 %v3926_v36  ;;  %v5280_v17 = vand.u32 4294901760, %v3799_v22 }
  0x54   :  { %365 = vmatmul.f32.gmra.mxu3 %v5279_v9  ;;  %970 = vmatpush.msrb.mxu0 %v3875_v3  ;;  %v5294_v9 = vld [vmem:[#allocation18_spill] sm:$0xff] }
  0x55   :  { %686 = vmatpush.msrb.mxu3 %v3883_v6  ;;  %646 = vmatpush.msrb.mxu2 %v3946_v46 }
  0x56   :  { %1018 = vmatpush.msrb.mxu1 %v3839_v51  ;;  %973 = vmatpush.msrb.mxu0 %v3886_v7 }
  0x57   :  { %688 = vmatpush.msrb.mxu3 %v3907_v20  ;;  %649 = vmatpush.msrb.mxu2 %v3956_v62 }
  0x58   :  { %1020 = vmatpush.msrb.mxu1 %v3852_v56  ;;  %976 = vmatpush.msrb.mxu0 %v3915_v29 }
  0x59   :  { %690 = vmatpush.msrb.mxu3 %v3923_v35  ;;  %652 = vmatpush.msrb.mxu2 %v3978_v27 }
  0x5a   :  { %412 = vmatmul.f32.gmra.mxu0 %v3814_v33  ;;  %305 = vmatmul.f32.gmra.mxu2 %v3799_v22  ;;  %v3708_v22 = vmov 0.0  }
  0x5b   :  { %463 = vmatmul.f32.gmra.mxu1 %v3814_v33  ;;  %692 = vmatpush.msrb.mxu3 %v3935_v41  ;;  %v5284_v33 = vld [vmem:[#allocation24_spill] sm:$0xff] }
  0x5c   :  { %371 = vmatmul.f32.gmra.mxu3 %v5280_v17  ;;  %1022 = vmatpush.msrb.mxu1 %v3860_v61 }
  0x5d   :  { %655 = vmatpush.msrb.mxu2 %v3995_v42  ;;  %979 = vmatpush.msrb.mxu0 %v3926_v36 }
  0x5e   :  { %1024 = vmatpush.msrb.mxu1 %v3883_v6  ;;  %694 = vmatpush.msrb.mxu3 %v3953_v59 }
  0x5f   :  { %658 = vmatpush.msrb.mxu2 %v4022_v18  ;;  %982 = vmatpush.msrb.mxu0 %v3946_v46 }
  0x60   :  { %1026 = vmatpush.msrb.mxu1 %v3907_v20  ;;  %696 = vmatpush.msrb.mxu3 %v3975_v21 }
  0x61   :  { %985 = vmatpush.msrb.mxu0 %v3956_v62  ;;  %661 = vmatpush.msrb.mxu2 %v4033_v34 }
  0x62   :  { %416 = vmatmul.f32.gmra.mxu0 %v3842_v52  ;;  %310 = vmatmul.f32.gmra.mxu2 %v3806_v26  ;;  %v5282_v26 = vld [vmem:[#allocation22_spill] sm:$0xff] }
  0x63   :  { %467 = vmatmul.f32.gmra.mxu1 %v3842_v52  ;;  %698 = vmatpush.msrb.mxu3 %v3992_v28  ;;  %v5285_v52 = vld [vmem:[#allocation27_spill] sm:$0xff] }
  0x64   :  { %377 = vmatmul.f32.gmra.mxu3 %v5281_v19  ;;  %1028 = vmatpush.msrb.mxu1 %v3923_v35  ;;  %v5295_v19 = vld [vmem:[#allocation21_spill] sm:$0xff] }
  0x65   :  { %664 = vmatpush.msrb.mxu2 %v4055_v14  ;;  %988 = vmatpush.msrb.mxu0 %v3978_v27 }
  0x66   :  { %1030 = vmatpush.msrb.mxu1 %v3935_v41  ;;  %700 = vmatpush.msrb.mxu3 %v4013_v16 }
  0x67   :  { %667 = vmatpush.msrb.mxu2 %v4082_v24  ;;  %991 = vmatpush.msrb.mxu0 %v3995_v42 }
  0x68   :  { %1032 = vmatpush.msrb.mxu1 %v3953_v59  ;;  %702 = vmatpush.msrb.mxu3 %v4026_v60 }
  0x69   :  { %994 = vmatpush.msrb.mxu0 %v4022_v18  ;;  %670 = vmatpush.msrb.mxu2 %v4091_v4 }
  0x6a   :  { %420 = vmatmul.f32.gmra.mxu0 %v3930_v39  ;;  %519 = vmatmul.f32.vlgmr.msra.gmra.mxu2 %v3708_v22 }
  0x6b   :  { %471 = vmatmul.f32.gmra.mxu1 %v3930_v39  ;;  %818 = vmatpush.msra.mxu2 %v3823_v44  ;;  %v5287_v39 = vld [vmem:[#allocation31_spill] sm:$0xff] }
  0x6c   :  { %619 = vmatmul.f32.vlgmr.msra.gmra.mxu3 %v3708_v22  ;;  %1034 = vmatpush.msrb.mxu1 %v3975_v21 }
  0x6d   :  { %704 = vmatpush.msrb.mxu3 %v4052_v37  ;;  %820 = vmatpush.msra.mxu2 %v3837_v50 }
  0x6e   :  { %997 = vmatpush.msrb.mxu0 %v4033_v34  ;;  %1036 = vmatpush.msrb.mxu1 %v3992_v28 }
  0x6f   :  { %706 = vmatpush.msrb.mxu3 %v4066_v45  ;;  %822 = vmatpush.msra.mxu2 %v3839_v51 }
  0x70   :  { %1038 = vmatpush.msrb.mxu1 %v4013_v16  ;;  %1000 = vmatpush.msrb.mxu0 %v4055_v14 }
  0x71   :  { %863 = vmatpush.msra.mxu3 %v3888_v10  ;;  %824 = vmatpush.msra.mxu2 %v3852_v56 }
  0x72   :  { %424 = vmatmul.f32.gmra.mxu0 %v4008_v31  ;;  %671 = vmatmul.f32.vlgmr.msrb.gmra.mxu2 %v3708_v22 }
  0x73   :  { %869 = vmatpush.msra.mxu3 %v3910_v23  ;;  %475 = vmatmul.f32.gmra.mxu1 %v4008_v31  ;;  %v5283_v31 = vld [vmem:[#allocation11_spill] sm:$0xff] }
  0x74   :  { %707 = vmatmul.f32.vlgmr.msrb.gmra.mxu3 %v3708_v22  ;;  %826 = vmatpush.msra.mxu2 %v3860_v61 }
  0x75   :  { %875 = vmatpush.msra.mxu3 %v3919_v30  ;;  %1003 = vmatpush.msrb.mxu0 %v4082_v24 }
  0x76   :  { %1040 = vmatpush.msrb.mxu1 %v4026_v60  ;;  %828 = vmatpush.msra.mxu2 %v3883_v6 }
  0x77   :  { %881 = vmatpush.msra.mxu3 %v5282_v26  ;;  %1006 = vmatpush.msrb.mxu0 %v4091_v4 }
  0x78   :  { %1042 = vmatpush.msrb.mxu1 %v4052_v37  ;;  %830 = vmatpush.msra.mxu2 %v3907_v20 }
  0x79   :  { %887 = vmatpush.msra.mxu3 %v5284_v33 }
  0x7a   :  { %428 = vmatmul.f32.gmra.mxu0 %v5283_v31  ;;  %1044 = vmatpush.msrb.mxu1 %v4066_v45 }
  0x7b   :  { %479 = vmatmul.f32.gmra.mxu1 %v5283_v31  ;;  %893 = vmatpush.msra.mxu3 %v5285_v52  ;;  %v5296_v31 = vld [vmem:[#allocation23_spill] sm:$0xff] }
  0x7c   :  { %832 = vmatpush.msra.mxu2 %v3923_v35 }
  0x7d   :  { %899 = vmatpush.msra.mxu3 %v5286_v5 }
  0x7e   :  { %834 = vmatpush.msra.mxu2 %v3935_v41 }
  0x7f   :  { %905 = vmatpush.msra.mxu3 %v5287_v39 }
  0x80   :  { %836 = vmatpush.msra.mxu2 %v3953_v59 }
  0x81   :  { %911 = vmatpush.msra.mxu3 %v4043_v40 }
  0x82   :  { %432 = vmatmul.f32.gmra.mxu0 %v5288_v63  ;;  %838 = vmatpush.msra.mxu2 %v3975_v21 }
  0x83   :  { %483 = vmatmul.f32.gmra.mxu1 %v5288_v63  ;;  %917 = vmatpush.msra.mxu3 %v4061_v11  ;;  %v5297_v63 = vld [vmem:[#allocation25_spill] sm:$0xff] }
  0x84   :  { %840 = vmatpush.msra.mxu2 %v3992_v28 }
  0x85   :  { %923 = vmatpush.msra.mxu3 %v5289_v12 }
  0x86   :  { %842 = vmatpush.msra.mxu2 %v4013_v16 }
  0x87   :  { %929 = vmatpush.msra.mxu3 %v4099_v38 }
  0x88   :  { %844 = vmatpush.msra.mxu2 %v4026_v60 }
  0x89   :  { %935 = vmatpush.msra.mxu3 %v4110_v48 }
  0x8a   :  { %775 = vmatmul.f32.vlgmr.msra.gmra.mxu0 %v3708_v22  ;;  %846 = vmatpush.msra.mxu2 %v4052_v37 }
  0x8b   :  { %1161 = vmatpush.msra.mxu0 %v3823_v44  ;;  %811 = vmatmul.f32.vlgmr.msra.gmra.mxu1 %v3708_v22 }
  0x8c   :  { %941 = vmatpush.msra.mxu3 %v4120_v58  ;;  %848 = vmatpush.msra.mxu2 %v4066_v45 }
  0x8d   :  { %1206 = vmatpush.msra.mxu1 %v3888_v10  ;;  %1163 = vmatpush.msra.mxu0 %v3837_v50 }
  0x8e   :  { %947 = vmatpush.msra.mxu3 %v4133_v13  ;;  %1055 = vmatpush.msrb.mxu2 %v5290_v32 }
  0x8f   :  { %1212 = vmatpush.msra.mxu1 %v3910_v23  ;;  %1165 = vmatpush.msra.mxu0 %v3839_v51 }
  0x90   :  { %953 = vmatpush.msra.mxu3 %v4139_v54  ;;  %1059 = vmatpush.msrb.mxu2 %v5291_v47 }
  0x91   :  { %1218 = vmatpush.msra.mxu1 %v3919_v30  ;;  %1167 = vmatpush.msra.mxu0 %v3852_v56  ;;  %v5299_v30 = vld [vmem:[#allocation30_spill] sm:$0xff] }
  0x92   :  { %1122 = vmatpush.msrb.mxu3 %v3823_v44  ;;  %1063 = vmatpush.msrb.mxu2 %v5292_v1 }
  0x93   :  { %1224 = vmatpush.msra.mxu1 %v5282_v26  ;;  %1169 = vmatpush.msra.mxu0 %v3860_v61 }
  0x94   :  { %1124 = vmatpush.msrb.mxu3 %v3837_v50  ;;  %1067 = vmatpush.msrb.mxu2 %v5293_v15 }
  0x95   :  { %1230 = vmatpush.msra.mxu1 %v5284_v33  ;;  %1171 = vmatpush.msra.mxu0 %v3883_v6  ;;  %v5298_v33 = vld [vmem:[#allocation26_spill] sm:$0xff] }
  0x96   :  { %1126 = vmatpush.msrb.mxu3 %v3839_v51  ;;  %1071 = vmatpush.msrb.mxu2 %v5294_v9  ;;  %v135_v17 = vpop.f32.mrf.mxu0 }
  0x97   :  { %1236 = vmatpush.msra.mxu1 %v5285_v52  ;;  %1173 = vmatpush.msra.mxu0 %v3907_v20  ;;  %v4308_v52 = vld [vmem:[%s5135_s3] ss:$0 sm:$0xff] }
  0x98   :  { %1128 = vmatpush.msrb.mxu3 %v3852_v56  ;;  %1075 = vmatpush.msrb.mxu2 %v5295_v19  ;;  %v222_v22 = vpop.f32.mrf.mxu1 }
  0x99   :  { %1242 = vmatpush.msra.mxu1 %v5286_v5  ;;  %1175 = vmatpush.msra.mxu0 %v3923_v35 }
  0x9a   :  { %1130 = vmatpush.msrb.mxu3 %v3860_v61  ;;  %1079 = vmatpush.msrb.mxu2 %v5296_v31 }
  0x9b   :  { %1248 = vmatpush.msra.mxu1 %v5287_v39  ;;  %1177 = vmatpush.msra.mxu0 %v3935_v41 }
  0x9c   :  { %1132 = vmatpush.msrb.mxu3 %v3883_v6  ;;  %1083 = vmatpush.msrb.mxu2 %v5297_v63  ;;  %v183_v5 = vpop.f32.mrf.mxu2 }
  0x9d   :  { %1254 = vmatpush.msra.mxu1 %v4043_v40  ;;  %v184_v39 = vadd.f32 %v4308_v52, %v183_v5  ;;  %1179 = vmatpush.msra.mxu0 %v3953_v59 }
  0x9e   :  { %1134 = vmatpush.msrb.mxu3 %v3907_v20  ;;  %1087 = vmatpush.msrb.mxu2 %v5298_v33  ;;  %v143_v26 = vpop.f32.mrf.mxu0  ;;  %v246_v4 = vpop.f32.mrf.mxu3 }
  0x9f   :  { %1260 = vmatpush.msra.mxu1 %v4061_v11  ;;  %v4319_v24 = vadd.f32 %v246_v4, %v184_v39  ;;  %1181 = vmatpush.msra.mxu0 %v3975_v21 }
  0xa0   :  { %1136 = vmatpush.msrb.mxu3 %v3923_v35  ;;  %1091 = vmatpush.msrb.mxu2 %v5299_v30  ;;  %v226_v40 = vpop.f32.mrf.mxu1 }
  0xa1   :  { %1266 = vmatpush.msra.mxu1 %v5289_v12  ;;  %1183 = vmatpush.msra.mxu0 %v3992_v28  ;;  %v136_v12 = vadd.f32 %v4308_v52, %v135_v17 }
  0xa2   :  { %1138 = vmatpush.msrb.mxu3 %v3935_v41  ;;  %1095 = vmatpush.msrb.mxu2 %v4019_v2 }
  0xa3   :  { %1272 = vmatpush.msra.mxu1 %v4099_v38  ;;  %1185 = vmatpush.msra.mxu0 %v4013_v16  ;;  %v223_v17 = vadd.f32 %v222_v22, %v136_v12 }
  0xa4   :  { %1140 = vmatpush.msrb.mxu3 %v3953_v59  ;;  %1099 = vmatpush.msrb.mxu2 %v4050_v53 }
  0xa5   :  { %1278 = vmatpush.msra.mxu1 %v4110_v48  ;;  %v191_v4 = vpop.f32.mrf.mxu2  ;;  %1187 = vmatpush.msra.mxu0 %v4026_v60 }
  0xa6   :  { %1142 = vmatpush.msrb.mxu3 %v3975_v21  ;;  %1103 = vmatpush.msrb.mxu2 %v4064_v0  ;;  %v192_v5 = vadd.f32 %v4308_v52, %v191_v4  ;;  %v151_v39 = vpop.f32.mrf.mxu0 }
  0xa7   :  { %1284 = vmatpush.msra.mxu1 %v4120_v58  ;;  %v250_v38 = vpop.f32.mrf.mxu3  ;;  %1189 = vmatpush.msra.mxu0 %v4052_v37 }
  0xa8   :  { %1144 = vmatpush.msrb.mxu3 %v3992_v28  ;;  %1107 = vmatpush.msrb.mxu2 %v4079_v43  ;;  %v4339_v48 = vadd.f32 %v250_v38, %v192_v5  ;;  %v230_v11 = vpop.f32.mrf.mxu1 }
  0xa9   :  { %1290 = vmatpush.msra.mxu1 %v4133_v13  ;;  %1191 = vmatpush.msra.mxu0 %v4066_v45 }
  0xaa   :  { %1146 = vmatpush.msrb.mxu3 %v4013_v16  ;;  %1111 = vmatpush.msrb.mxu2 %v4104_v8  ;;  %v144_v8 = vadd.f32 %v4308_v52, %v143_v26 }
  0xab   :  { %1296 = vmatpush.msra.mxu1 %v4139_v54 }
  0xac   :  { %1148 = vmatpush.msrb.mxu3 %v4026_v60  ;;  %1115 = vmatpush.msrb.mxu2 %v4113_v25  ;;  %v227_v43 = vadd.f32 %v226_v40, %v144_v8 }
  0xad   :  { %v276_v38 = vpop.f32.mrf.mxu2 }
  0xae   :  { %1150 = vmatpush.msrb.mxu3 %v4052_v37  ;;  %v277_v4 = vadd.f32 %v276_v38, %v223_v17  ;;  %v159_v5 = vpop.f32.mrf.mxu0  ;;  %v152_v17 = vadd.f32 %v4308_v52, %v151_v39 }
  0xaf   :  { %v160_v13 = vadd.f32 %v4308_v52, %v159_v5  ;;  %v336_v58 = vpop.f32.mrf.mxu3 }
  0xb0   :  { %1152 = vmatpush.msrb.mxu3 %v4066_v45  ;;  %v337_v23 = vadd.f32 %v336_v58, %v277_v4  ;;  %v234_v14 = vpop.f32.mrf.mxu1  ;;  %v231_v18 = vadd.f32 %v230_v11, %v152_v17 }
  0xb1   :  { %v235_v54 = vadd.f32 %v234_v14, %v160_v13 }
  0xb5   :  { %v281_v25 = vpop.f32.mrf.mxu2 }
  0xb6   :  { %v282_v10 = vadd.f32 %v281_v25, %v227_v43  ;;  %v167_v34 = vpop.f32.mrf.mxu0 }
  0xb7   :  { %v168_v12 = vadd.f32 %v4308_v52, %v167_v34  ;;  %v342_v22 = vpop.f32.mrf.mxu3 }
  0xb8   :  { %v343_v38 = vadd.f32 %v342_v22, %v282_v10  ;;  %v238_v0 = vpop.f32.mrf.mxu1 }
  0xb9   :  { %v239_v45 = vadd.f32 %v238_v0, %v168_v12 }
  0xbd   :  { %v286_v5 = vpop.f32.mrf.mxu2 }
  0xbe   :  { %v287_v53 = vadd.f32 %v286_v5, %v231_v18  ;;  %v175_v37 = vpop.f32.mrf.mxu0 }
  0xbf   :  { %v176_v58 = vadd.f32 %v4308_v52, %v175_v37  ;;  %v348_v26 = vpop.f32.mrf.mxu3 }
  0xc0   :  { %v349_v14 = vadd.f32 %v348_v26, %v287_v53  ;;  %v242_v40 = vpop.f32.mrf.mxu1 }
  0xc1   :  { %v243_v8 = vadd.f32 %v242_v40, %v176_v58 }
  0xc5   :  { %v291_v43 = vpop.f32.mrf.mxu2 }
  0xc6   :  { %v292_v25 = vadd.f32 %v291_v43, %v235_v54 }
  0xc7   :  { %v405_v13 = vpop.f32.mrf.mxu0  ;;  %v354_v34 = vpop.f32.mrf.mxu3 }
  0xc8   :  { %v406_v4 = vadd.f32 %v405_v13, %v337_v23  ;;  %v355_v42 = vadd.f32 %v354_v34, %v292_v25  ;;  %v456_v39 = vpop.f32.mrf.mxu1 }
  0xca   :  { %v457_v10 = vadd.f32 %v456_v39, %v406_v4 }
  0xcd   :  { %v296_v22 = vpop.f32.mrf.mxu2 }
  0xce   :  { %v297_v0 = vadd.f32 %v296_v22, %v239_v45 }
  0xcf   :  { %v409_v11 = vpop.f32.mrf.mxu0  ;;  %v360_v12 = vpop.f32.mrf.mxu3 }
  0xd0   :  { %v410_v18 = vadd.f32 %v409_v11, %v343_v38  ;;  %v361_v17 = vadd.f32 %v360_v12, %v297_v0  ;;  %v460_v5 = vpop.f32.mrf.mxu1 }
  0xd2   :  { %v4356_v37 = vadd.f32 %v460_v5, %v410_v18 }
  0xd5   :  { %v301_v53 = vpop.f32.mrf.mxu2 }
  0xd6   :  { %v302_v52 = vadd.f32 %v301_v53, %v243_v8 }
  0xd7   :  { %v413_v58 = vpop.f32.mrf.mxu0  ;;  %v366_v26 = vpop.f32.mrf.mxu3 }
  0xd8   :  { %v414_v54 = vadd.f32 %v413_v58, %v349_v14  ;;  %v367_v40 = vadd.f32 %v366_v26, %v302_v52  ;;  %v464_v43 = vpop.f32.mrf.mxu1 }
  0xda   :  { %v4358_v23 = vadd.f32 %v464_v43, %v414_v54 }
  0xdc   :  { %5300 = vst [vmem:[#allocation11_spill] sm:$0xff] %v4358_v23  ;;  %v5333_v23 = vld [vmem:[#allocation50_spill] sm:$0xff] }
  0xdd   :  { %v306_v25 = vpop.f32.mrf.mxu2 }
  0xde   :  { %v307_v13 = vadd.f32 %v306_v25, %v4319_v24 }
  0xdf   :  { %v417_v45 = vpop.f32.mrf.mxu0  ;;  %v372_v34 = vpop.f32.mrf.mxu3 }
  0xe0   :  { %v418_v4 = vadd.f32 %v417_v45, %v355_v42  ;;  %v373_v38 = vadd.f32 %v372_v34, %v307_v13  ;;  %v468_v39 = vpop.f32.mrf.mxu1 }
  0xe2   :  { %v4361_v22 = vadd.f32 %v468_v39, %v418_v4 }
  0xe4   :  { %5301 = vst [vmem:[#allocation12_spill] sm:$0xff] %v4361_v22  ;;  %v5332_v22 = vld [vmem:[#allocation49_spill] sm:$0xff] }
  0xe5   :  { %v311_v0 = vpop.f32.mrf.mxu2 }
  0xe6   :  { %v312_v8 = vadd.f32 %v311_v0, %v4339_v48 }
  0xe7   :  { %v421_v11 = vpop.f32.mrf.mxu0  ;;  %v378_v12 = vpop.f32.mrf.mxu3 }
  0xe8   :  { %v422_v14 = vadd.f32 %v421_v11, %v361_v17  ;;  %v379_v18 = vadd.f32 %v378_v12, %v312_v8  ;;  %v472_v5 = vpop.f32.mrf.mxu1 }
  0xea   :  { %v4364_v53 = vadd.f32 %v472_v5, %v422_v14 }
  0xec   :  { %5302 = vst [vmem:[#allocation13_spill] sm:$0xff] %v4364_v53  ;;  %v5331_v53 = vld [vmem:[#allocation47_spill] sm:$0xff] }
  0xed   :  { %v520_v42 = vpop.f32.mrf.mxu2 }
  0xef   :  { %v425_v52 = vpop.f32.mrf.mxu0  ;;  %v620_v25 = vpop.f32.mrf.mxu3 }
  0xf0   :  { %v426_v58 = vadd.f32 %v425_v52, %v367_v40  ;;  %v476_v24 = vpop.f32.mrf.mxu1  ;;  %v621_v48 = vadd.f32 %v620_v25, %v520_v42  ;;  %v5307_v25 = vld [vmem:[#allocation36_spill] sm:$0xff] }
  0xf2   :  { %v4366_v26 = vadd.f32 %v476_v24, %v426_v58 }
  0xf4   :  { %5303 = vst [vmem:[#allocation14_spill] sm:$0xff] %v4366_v26  ;;  %v5330_v26 = vld [vmem:[#allocation45_spill] sm:$0xff] }
  0xf5   :  { %v672_v34 = vpop.f32.mrf.mxu2 }
  0xf6   :  { %v673_v0 = vadd.f32 %v672_v34, %v621_v48  ;;  %v5309_v48 = vld [vmem:[#allocation32_spill] sm:$0xff] }
  0xf7   :  { %v429_v54 = vpop.f32.mrf.mxu0  ;;  %v708_v11 = vpop.f32.mrf.mxu3  ;;  %v5310_v34 = vld [vmem:[#allocation40_spill] sm:$0xff] }
  0xf8   :  { %v430_v43 = vadd.f32 %v429_v54, %v373_v38  ;;  %v480_v13 = vpop.f32.mrf.mxu1  ;;  %v709_v40 = vadd.f32 %v708_v11, %v673_v0  ;;  %v5314_v0 = vld [vmem:[#allocation42_spill] sm:$0xff]  ;;  %v5315_v11 = vld [vmem:[#allocation37_spill] sm:$0xff] }
  0xfa   :  { %v4368_v45 = vadd.f32 %v480_v13, %v430_v43  ;;  %v5306_v43 = vld [vmem:[#allocation28_spill] sm:$0xff]  ;;  %v5308_v13 = vld [vmem:[#allocation35_spill] sm:$0xff] }
  0xfc   :  { %5304 = vst [vmem:[#allocation15_spill] sm:$0xff] %v4368_v45  ;;  %v5329_v45 = vld [vmem:[#allocation41_spill] sm:$0xff] }
  0xff   :  { %v433_v4 = vpop.f32.mrf.mxu0 }
 0x100   :  { %v434_v17 = vadd.f32 %v433_v4, %v379_v18  ;;  %v484_v39 = vpop.f32.mrf.mxu1  ;;  %v5311_v4 = vld [vmem:[#allocation39_spill] sm:$0xff] }
 0x102   :  { %v4370_v8 = vadd.f32 %v484_v39, %v434_v17  ;;  %v5312_v17 = vld [vmem:[#allocation33_spill] sm:$0xff]  ;;  %v5313_v39 = vld [vmem:[#allocation16_spill] sm:$0xff] }
 0x104   :  { %5305 = vst [vmem:[#allocation17_spill] sm:$0xff] %v4370_v8  ;;  %v5328_v8 = vld [vmem:[#allocation38_spill] sm:$0xff] }
 0x107   :  { %v776_v12 = vpop.f32.mrf.mxu0 }
 0x108   :  { %v777_v14 = vadd.f32 %v776_v12, %v709_v40  ;;  %v812_v5 = vpop.f32.mrf.mxu1  ;;  %v5316_v40 = vld [vmem:[#allocation19_spill] sm:$0xff]  ;;  %v5317_v12 = vld [vmem:[#allocation46_spill] sm:$0xff] }
 0x10a   :  { %v813_v52 = vadd.f32 %v812_v5, %v777_v14  ;;  %v5318_v14 = vld [vmem:[#allocation43_spill] sm:$0xff]  ;;  %v5319_v5 = vld [vmem:[#allocation20_spill] sm:$0xff] }
 0x10c   :  { %v815_v58 = vadd.f32 %v813_v52, %v457_v10  ;;  %v5320_v52 = vld [vmem:[#allocation48_spill] sm:$0xff] }
 0x10e   :  { %3610 = vtanh.f32 %v815_v58  ;;  %v5321_v58 = vld [vmem:[#allocation44_spill] sm:$0xff] }
 0x114   :  { %v3611_v38 = vpop.eup %3610 }
 0x115   :  { %v849_v24 = vand.u32 4294901760, %v3611_v38 }
 0x117   :  { %955 = vmatmul.f32.vlgmr.msra.gmra.mxu3 %v849_v24  ;;  %v850_v54 = vsub.f32 %v3611_v38, %v849_v24  ;;  %v5322_v38 = vld [vmem:[#allocation22_spill] sm:$0xff] }
 0x118   :  { %1357 = vmatpush.msra.mxu3 %v3823_v44 }
 0x119   :  { %1009 = vmatmul.f32.vlgmr.msrb.gmra.mxu0 %v850_v54  ;;  %v851_v18 = vand.u32 4294901760, %v850_v54 }
 0x11a   :  { %1359 = vmatpush.msra.mxu3 %v3837_v50  ;;  %1398 = vmatpush.msrb.mxu0 %v5290_v32 }
 0x11b   :  { %1048 = vmatmul.f32.vlgmr.msrb.gmra.mxu1 %v851_v18  ;;  %v852_v42 = vsub.f32 %v850_v54, %v851_v18  ;;  %v5324_v54 = vld [vmem:[#allocation27_spill] sm:$0xff]  ;;  %v5325_v18 = vld [vmem:[#allocation29_spill] sm:$0xff] }
 0x11c   :  { %1361 = vmatpush.msra.mxu3 %v3839_v51  ;;  %1465 = vmatpush.msrb.mxu1 %v3823_v44 }
 0x11d   :  { %v853_v10 = vand.u32 4294901760, %v852_v42  ;;  %1402 = vmatpush.msrb.mxu0 %v5291_v47  ;;  %v5326_v42 = vld [vmem:[#allocation31_spill] sm:$0xff] }
 0x11e   :  { %1363 = vmatpush.msra.mxu3 %v3852_v56  ;;  %1467 = vmatpush.msrb.mxu1 %v3837_v50 }
 0x11f   :  { %854 = vmatmul.f32.vlgmr.msra.gmra.mxu2 %v853_v10  ;;  %1154 = vmatmul.f32.vlgmr.msrb.gmra.mxu3 %v849_v24  ;;  %v5327_v10 = vld [vmem:[#allocation34_spill] sm:$0xff] }
 0x120   :  { %1304 = vmatpush.msra.mxu2 %v3835_v49  ;;  %1365 = vmatpush.msra.mxu3 %v3860_v61 }
 0x121   :  { %1469 = vmatpush.msrb.mxu1 %v3839_v51  ;;  %1406 = vmatpush.msrb.mxu0 %v5292_v1 }
 0x122   :  { %1307 = vmatpush.msra.mxu2 %v3850_v55  ;;  %1367 = vmatpush.msra.mxu3 %v3883_v6 }
 0x123   :  { %1471 = vmatpush.msrb.mxu1 %v3852_v56  ;;  %1410 = vmatpush.msrb.mxu0 %v5293_v15 }
 0x124   :  { %1310 = vmatpush.msra.mxu2 %v3855_v57  ;;  %1369 = vmatpush.msra.mxu3 %v3907_v20 }
 0x125   :  { %1473 = vmatpush.msrb.mxu1 %v3860_v61  ;;  %1414 = vmatpush.msrb.mxu0 %v5294_v9 }
 0x126   :  { %1313 = vmatpush.msra.mxu2 %v3875_v3  ;;  %1371 = vmatpush.msra.mxu3 %v3923_v35 }
 0x127   :  { %1117 = vmatmul.f32.vlgmr.msrb.gmra.mxu2 %v849_v24  ;;  %1475 = vmatpush.msrb.mxu1 %v3883_v6  ;;  %v5323_v24 = vld [vmem:[#allocation24_spill] sm:$0xff] }
 0x128   :  { %1316 = vmatpush.msra.mxu2 %v3886_v7  ;;  %1373 = vmatpush.msra.mxu3 %v3935_v41 }
 0x129   :  { %1477 = vmatpush.msrb.mxu1 %v3907_v20  ;;  %1418 = vmatpush.msrb.mxu0 %v5295_v19 }
 0x12a   :  { %1319 = vmatpush.msra.mxu2 %v3915_v29  ;;  %1375 = vmatpush.msra.mxu3 %v3953_v59 }
 0x12b   :  { %1479 = vmatpush.msrb.mxu1 %v3923_v35  ;;  %1422 = vmatpush.msrb.mxu0 %v5296_v31 }
 0x12c   :  { %1322 = vmatpush.msra.mxu2 %v3926_v36  ;;  %1377 = vmatpush.msra.mxu3 %v3975_v21 }
 0x12d   :  { %1481 = vmatpush.msrb.mxu1 %v3935_v41  ;;  %1426 = vmatpush.msrb.mxu0 %v5297_v63 }
 0x12e   :  { %1325 = vmatpush.msra.mxu2 %v3946_v46  ;;  %1379 = vmatpush.msra.mxu3 %v3992_v28 }
 0x12f   :  { %1483 = vmatpush.msrb.mxu1 %v3953_v59  ;;  %1430 = vmatpush.msrb.mxu0 %v5298_v33 }
 0x130   :  { %1328 = vmatpush.msra.mxu2 %v3956_v62  ;;  %1381 = vmatpush.msra.mxu3 %v4013_v16 }
 0x131   :  { %1485 = vmatpush.msrb.mxu1 %v3975_v21  ;;  %1434 = vmatpush.msrb.mxu0 %v5299_v30 }
 0x132   :  { %1331 = vmatpush.msra.mxu2 %v3978_v27  ;;  %1383 = vmatpush.msra.mxu3 %v4026_v60 }
 0x133   :  { %1487 = vmatpush.msrb.mxu1 %v3992_v28  ;;  %1438 = vmatpush.msrb.mxu0 %v4019_v2 }
 0x134   :  { %1334 = vmatpush.msra.mxu2 %v5306_v43  ;;  %1385 = vmatpush.msra.mxu3 %v5307_v25 }
 0x135   :  { %1489 = vmatpush.msrb.mxu1 %v4013_v16  ;;  %1442 = vmatpush.msrb.mxu0 %v5308_v13 }
 0x136   :  { %1337 = vmatpush.msra.mxu2 %v5309_v48  ;;  %1387 = vmatpush.msra.mxu3 %v5310_v34 }
 0x137   :  { %1491 = vmatpush.msrb.mxu1 %v4026_v60  ;;  %1446 = vmatpush.msrb.mxu0 %v5311_v4 }
 0x138   :  { %1340 = vmatpush.msra.mxu2 %v5312_v17  ;;  %1549 = vmatpush.msrb.mxu3 %v5313_v39 }
 0x139   :  { %1493 = vmatpush.msrb.mxu1 %v5307_v25  ;;  %1450 = vmatpush.msrb.mxu0 %v5314_v0 }
 0x13a   :  { %1343 = vmatpush.msra.mxu2 %v5315_v11  ;;  %1555 = vmatpush.msrb.mxu3 %v5316_v40 }
 0x13b   :  { %1495 = vmatpush.msrb.mxu1 %v5310_v34  ;;  %1454 = vmatpush.msrb.mxu0 %v5317_v12 }
 0x13c   :  { %1346 = vmatpush.msra.mxu2 %v5318_v14  ;;  %1561 = vmatpush.msrb.mxu3 %v5319_v5 }
 0x13d   :  { %1458 = vmatpush.msrb.mxu0 %v5320_v52 }
 0x13e   :  { %1349 = vmatpush.msra.mxu2 %v5321_v58  ;;  %1567 = vmatpush.msrb.mxu3 %v5322_v38 }
 0x140   :  { %1504 = vmatpush.msrb.mxu2 %v3823_v44  ;;  %1573 = vmatpush.msrb.mxu3 %v5323_v24 }
 0x142   :  { %1506 = vmatpush.msrb.mxu2 %v3837_v50  ;;  %1579 = vmatpush.msrb.mxu3 %v5324_v54 }
 0x144   :  { %1508 = vmatpush.msrb.mxu2 %v3839_v51  ;;  %1585 = vmatpush.msrb.mxu3 %v5325_v18 }
 0x146   :  { %1510 = vmatpush.msrb.mxu2 %v3852_v56  ;;  %1591 = vmatpush.msrb.mxu3 %v5326_v42 }
 0x148   :  { %1512 = vmatpush.msrb.mxu2 %v3860_v61  ;;  %1597 = vmatpush.msrb.mxu3 %v5327_v10 }
 0x14a   :  { %1514 = vmatpush.msrb.mxu2 %v3883_v6  ;;  %1603 = vmatpush.msrb.mxu3 %v5328_v8  ;;  %v5334_v8 = vld [vmem:[#allocation51_spill] sm:$0xff] }
 0x14c   :  { %1516 = vmatpush.msrb.mxu2 %v3907_v20  ;;  %1609 = vmatpush.msrb.mxu3 %v5329_v45 }
 0x14e   :  { %1518 = vmatpush.msrb.mxu2 %v3923_v35  ;;  %1615 = vmatpush.msrb.mxu3 %v5330_v26 }
 0x150   :  { %1520 = vmatpush.msrb.mxu2 %v3935_v41  ;;  %1621 = vmatpush.msrb.mxu3 %v5331_v53 }
 0x152   :  { %1522 = vmatpush.msrb.mxu2 %v3953_v59  ;;  %1627 = vmatpush.msrb.mxu3 %v5332_v22 }
 0x154   :  { %1524 = vmatpush.msrb.mxu2 %v3975_v21  ;;  %1633 = vmatpush.msrb.mxu3 %v5333_v23 }
 0x156   :  { %1526 = vmatpush.msrb.mxu2 %v3992_v28  ;;  %1639 = vmatpush.msrb.mxu3 %v5334_v8 }
 0x158   :  { %1528 = vmatpush.msrb.mxu2 %v4013_v16 }
 0x15a   :  { %1530 = vmatpush.msrb.mxu2 %v4026_v60 }
 0x15c   :  { %1532 = vmatpush.msrb.mxu2 %v5307_v25 }
 0x15e   :  { %1534 = vmatpush.msrb.mxu2 %v5310_v34 }
 0x196   :  { %v1010_v22 = vpop.f32.mrf.mxu0 }
 0x198   :  { %v1049_v42 = vpop.f32.mrf.mxu1 }
 0x19a   :  { %v956_v53 = vpop.f32.mrf.mxu3 }
 0x1a2   :  { %v855_v26 = vpop.f32.mrf.mxu2  ;;  %v1155_v24 = vpop.f32.mrf.mxu3 }
 0x1a3   :  { %v957_v45 = vadd.f32 %v956_v53, %v855_v26  ;;  %v5336_v53 = vld [vmem:[#allocation20_spill] sm:$0xff] }
 0x1a4   :  { %v5337_v26 = vld [vmem:[#allocation48_spill] sm:$0xff] }
 0x1a5   :  { %v1011_v10 = vadd.f32 %v1010_v22, %v957_v45  ;;  %v5338_v45 = vld [vmem:[#allocation44_spill] sm:$0xff] }
 0x1a7   :  { %v1050_v18 = vadd.f32 %v1049_v42, %v1011_v10  ;;  %v5348_v42 = vld [vmem:[#allocation47_spill] sm:$0xff]  ;;  %v5349_v10 = vld [vmem:[#allocation49_spill] sm:$0xff] }
 0x1aa   :  { %v1118_v23 = vpop.f32.mrf.mxu2 }
 0x1ab   :  { %v1119_v54 = vadd.f32 %v1118_v23, %v1050_v18  ;;  %v5335_v23 = vld [vmem:[#allocation43_spill] sm:$0xff]  ;;  %v5347_v18 = vld [vmem:[#allocation45_spill] sm:$0xff] }
 0x1ad   :  { %v1156_v38 = vadd.f32 %v1155_v24, %v1119_v54  ;;  %v5345_v24 = vld [vmem:[#allocation38_spill] sm:$0xff]  ;;  %v5346_v54 = vld [vmem:[#allocation41_spill] sm:$0xff] }
 0x1af   :  { %v1158_v8 = vadd.f32 %v1156_v38, %v4356_v37  ;;  %v5344_v38 = vld [vmem:[#allocation34_spill] sm:$0xff] }
 0x1b1   :  { %3612 = vtanh.f32 %v1158_v8  ;;  %v5339_v8 = vld [vmem:[#allocation22_spill] sm:$0xff] }
 0x1b7   :  { %v3613_v58 = vpop.eup %3612 }
 0x1b8   :  { %v1192_v52 = vand.u32 4294901760, %v3613_v58 }
 0x1ba   :  { %1298 = vmatmul.f32.vlgmr.msra.gmra.mxu1 %v1192_v52  ;;  %v1193_v5 = vsub.f32 %v3613_v58, %v1192_v52  ;;  %v5343_v58 = vld [vmem:[#allocation31_spill] sm:$0xff] }
 0x1bb   :  { %1700 = vmatpush.msra.mxu1 %v3823_v44 }
 0x1bc   :  { %1352 = vmatmul.f32.vlgmr.msra.gmra.mxu2 %v1193_v5  ;;  %v1194_v14 = vand.u32 4294901760, %v1193_v5 }
 0x1bd   :  { %1702 = vmatpush.msra.mxu1 %v3837_v50  ;;  %1741 = vmatpush.msra.mxu2 %v5290_v32 }
 0x1be   :  { %1391 = vmatmul.f32.vlgmr.msra.gmra.mxu3 %v1194_v14  ;;  %v1195_v22 = vsub.f32 %v1193_v5, %v1194_v14  ;;  %v5340_v14 = vld [vmem:[#allocation24_spill] sm:$0xff]  ;;  %v5341_v5 = vld [vmem:[#allocation27_spill] sm:$0xff] }
 0x1bf   :  { %1704 = vmatpush.msra.mxu1 %v3839_v51  ;;  %1808 = vmatpush.msra.mxu3 %v3823_v44 }
 0x1c0   :  { %v1196_v37 = vand.u32 4294901760, %v1195_v22  ;;  %1745 = vmatpush.msra.mxu2 %v5291_v47  ;;  %v5350_v22 = vld [vmem:[#allocation50_spill] sm:$0xff] }
 0x1c1   :  { %1706 = vmatpush.msra.mxu1 %v3852_v56  ;;  %1810 = vmatpush.msra.mxu3 %v3837_v50 }
 0x1c2   :  { %1197 = vmatmul.f32.vlgmr.msra.gmra.mxu0 %v1196_v37  ;;  %1497 = vmatmul.f32.vlgmr.msrb.gmra.mxu1 %v1192_v52  ;;  %v5351_v37 = vld [vmem:[#allocation51_spill] sm:$0xff] }
 0x1c3   :  { %1647 = vmatpush.msra.mxu0 %v3835_v49  ;;  %1708 = vmatpush.msra.mxu1 %v3860_v61 }
 0x1c4   :  { %1812 = vmatpush.msra.mxu3 %v3839_v51  ;;  %1749 = vmatpush.msra.mxu2 %v5292_v1 }
 0x1c5   :  { %1650 = vmatpush.msra.mxu0 %v3850_v55  ;;  %1710 = vmatpush.msra.mxu1 %v3883_v6 }
 0x1c6   :  { %1814 = vmatpush.msra.mxu3 %v3852_v56  ;;  %1753 = vmatpush.msra.mxu2 %v5293_v15 }
 0x1c7   :  { %1653 = vmatpush.msra.mxu0 %v3855_v57  ;;  %1712 = vmatpush.msra.mxu1 %v3907_v20 }
 0x1c8   :  { %1816 = vmatpush.msra.mxu3 %v3860_v61  ;;  %1757 = vmatpush.msra.mxu2 %v5294_v9 }
 0x1c9   :  { %1656 = vmatpush.msra.mxu0 %v3875_v3  ;;  %1714 = vmatpush.msra.mxu1 %v3923_v35 }
 0x1ca   :  { %1460 = vmatmul.f32.vlgmr.msrb.gmra.mxu0 %v1192_v52  ;;  %1818 = vmatpush.msra.mxu3 %v3883_v6  ;;  %v5342_v52 = vld [vmem:[#allocation29_spill] sm:$0xff] }
 0x1cb   :  { %1659 = vmatpush.msra.mxu0 %v3886_v7  ;;  %1716 = vmatpush.msra.mxu1 %v3935_v41 }
 0x1cc   :  { %1820 = vmatpush.msra.mxu3 %v3907_v20  ;;  %1761 = vmatpush.msra.mxu2 %v5295_v19 }
 0x1cd   :  { %1662 = vmatpush.msra.mxu0 %v3915_v29  ;;  %1718 = vmatpush.msra.mxu1 %v3953_v59 }
 0x1ce   :  { %1822 = vmatpush.msra.mxu3 %v3923_v35  ;;  %1765 = vmatpush.msra.mxu2 %v5296_v31 }
 0x1cf   :  { %1665 = vmatpush.msra.mxu0 %v3926_v36  ;;  %1720 = vmatpush.msra.mxu1 %v3975_v21 }
 0x1d0   :  { %1824 = vmatpush.msra.mxu3 %v3935_v41  ;;  %1769 = vmatpush.msra.mxu2 %v5297_v63 }
 0x1d1   :  { %1668 = vmatpush.msra.mxu0 %v3946_v46  ;;  %1722 = vmatpush.msra.mxu1 %v3992_v28 }
 0x1d2   :  { %1826 = vmatpush.msra.mxu3 %v3953_v59  ;;  %1773 = vmatpush.msra.mxu2 %v5298_v33 }
 0x1d3   :  { %1671 = vmatpush.msra.mxu0 %v3956_v62  ;;  %1724 = vmatpush.msra.mxu1 %v4013_v16 }
 0x1d4   :  { %1828 = vmatpush.msra.mxu3 %v3975_v21  ;;  %1777 = vmatpush.msra.mxu2 %v5299_v30 }
 0x1d5   :  { %1674 = vmatpush.msra.mxu0 %v3978_v27  ;;  %1726 = vmatpush.msra.mxu1 %v4026_v60 }
 0x1d6   :  { %1830 = vmatpush.msra.mxu3 %v3992_v28  ;;  %1781 = vmatpush.msra.mxu2 %v4019_v2 }
 0x1d7   :  { %1677 = vmatpush.msra.mxu0 %v5306_v43  ;;  %1728 = vmatpush.msra.mxu1 %v5307_v25 }
 0x1d8   :  { %1832 = vmatpush.msra.mxu3 %v4013_v16  ;;  %1785 = vmatpush.msra.mxu2 %v5308_v13 }
 0x1d9   :  { %1680 = vmatpush.msra.mxu0 %v5309_v48  ;;  %1730 = vmatpush.msra.mxu1 %v5310_v34 }
 0x1da   :  { %1834 = vmatpush.msra.mxu3 %v4026_v60  ;;  %1789 = vmatpush.msra.mxu2 %v5311_v4 }
 0x1db   :  { %1683 = vmatpush.msra.mxu0 %v5312_v17  ;;  %1892 = vmatpush.msrb.mxu1 %v5313_v39 }
 0x1dc   :  { %1836 = vmatpush.msra.mxu3 %v5307_v25  ;;  %1793 = vmatpush.msra.mxu2 %v5314_v0 }
 0x1dd   :  { %1686 = vmatpush.msra.mxu0 %v5315_v11  ;;  %1898 = vmatpush.msrb.mxu1 %v5316_v40 }
 0x1de   :  { %1838 = vmatpush.msra.mxu3 %v5310_v34  ;;  %1797 = vmatpush.msra.mxu2 %v5317_v12 }
 0x1df   :  { %1689 = vmatpush.msra.mxu0 %v5335_v23  ;;  %1904 = vmatpush.msrb.mxu1 %v5336_v53 }
 0x1e0   :  { %1801 = vmatpush.msra.mxu2 %v5337_v26 }
 0x1e1   :  { %1692 = vmatpush.msra.mxu0 %v5338_v45  ;;  %1910 = vmatpush.msrb.mxu1 %v5339_v8 }
 0x1e3   :  { %1847 = vmatpush.msrb.mxu0 %v3823_v44  ;;  %1916 = vmatpush.msrb.mxu1 %v5340_v14 }
 0x1e5   :  { %1849 = vmatpush.msrb.mxu0 %v3837_v50  ;;  %1922 = vmatpush.msrb.mxu1 %v5341_v5 }
 0x1e7   :  { %1851 = vmatpush.msrb.mxu0 %v3839_v51  ;;  %1928 = vmatpush.msrb.mxu1 %v5342_v52 }
 0x1e9   :  { %1853 = vmatpush.msrb.mxu0 %v3852_v56  ;;  %1934 = vmatpush.msrb.mxu1 %v5343_v58 }
 0x1eb   :  { %1855 = vmatpush.msrb.mxu0 %v3860_v61  ;;  %1940 = vmatpush.msrb.mxu1 %v5344_v38 }
 0x1ed   :  { %1857 = vmatpush.msrb.mxu0 %v3883_v6  ;;  %1946 = vmatpush.msrb.mxu1 %v5345_v24 }
 0x1ef   :  { %1859 = vmatpush.msrb.mxu0 %v3907_v20  ;;  %1952 = vmatpush.msrb.mxu1 %v5346_v54 }
 0x1f1   :  { %1861 = vmatpush.msrb.mxu0 %v3923_v35  ;;  %1958 = vmatpush.msrb.mxu1 %v5347_v18 }
 0x1f3   :  { %1863 = vmatpush.msrb.mxu0 %v3935_v41  ;;  %1964 = vmatpush.msrb.mxu1 %v5348_v42 }
 0x1f5   :  { %1865 = vmatpush.msrb.mxu0 %v3953_v59  ;;  %1970 = vmatpush.msrb.mxu1 %v5349_v10 }
 0x1f7   :  { %1867 = vmatpush.msrb.mxu0 %v3975_v21  ;;  %1976 = vmatpush.msrb.mxu1 %v5350_v22 }
 0x1f9   :  { %1869 = vmatpush.msrb.mxu0 %v3992_v28  ;;  %1982 = vmatpush.msrb.mxu1 %v5351_v37  ;;  %v5352_v37 = vld [vmem:[#allocation11_spill] sm:$0xff] }
 0x1fb   :  { %1871 = vmatpush.msrb.mxu0 %v4013_v16 }
 0x1fd   :  { %1873 = vmatpush.msrb.mxu0 %v4026_v60 }
 0x1ff   :  { %1875 = vmatpush.msrb.mxu0 %v5307_v25 }
 0x201   :  { %1877 = vmatpush.msrb.mxu0 %v5310_v34 }
 0x237   :  { %v1299_v42 = vpop.f32.mrf.mxu1 }
 0x23f   :  { %v1198_v18 = vpop.f32.mrf.mxu0  ;;  %v1353_v10 = vpop.f32.mrf.mxu2 }
 0x240   :  { %v1300_v54 = vadd.f32 %v1299_v42, %v1198_v18  ;;  %v1498_v5 = vpop.f32.mrf.mxu1  ;;  %v5363_v18 = vld [vmem:[#allocation38_spill] sm:$0xff]  ;;  %v5364_v42 = vld [vmem:[#allocation41_spill] sm:$0xff] }
 0x241   :  { %v1392_v38 = vpop.f32.mrf.mxu3 }
 0x242   :  { %v1354_v24 = vadd.f32 %v1353_v10, %v1300_v54  ;;  %v5362_v54 = vld [vmem:[#allocation34_spill] sm:$0xff]  ;;  %v5365_v10 = vld [vmem:[#allocation45_spill] sm:$0xff] }
 0x244   :  { %v1393_v58 = vadd.f32 %v1392_v38, %v1354_v24  ;;  %v5361_v24 = vld [vmem:[#allocation31_spill] sm:$0xff] }
 0x247   :  { %v1461_v22 = vpop.f32.mrf.mxu0 }
 0x248   :  { %v1462_v52 = vadd.f32 %v1461_v22, %v1393_v58  ;;  %v5360_v58 = vld [vmem:[#allocation29_spill] sm:$0xff]  ;;  %v5366_v22 = vld [vmem:[#allocation47_spill] sm:$0xff] }
 0x24a   :  { %v1499_v14 = vadd.f32 %v1498_v5, %v1462_v52  ;;  %v5358_v5 = vld [vmem:[#allocation24_spill] sm:$0xff]  ;;  %v5359_v52 = vld [vmem:[#allocation27_spill] sm:$0xff] }
 0x24c   :  { %v1501_v8 = vadd.f32 %v1499_v14, %v5352_v37  ;;  %v5367_v37 = vld [vmem:[#allocation49_spill] sm:$0xff] }
 0x24e   :  { %3614 = vtanh.f32 %v1501_v8  ;;  %v5357_v8 = vld [vmem:[#allocation22_spill] sm:$0xff] }
 0x254   :  { %v3615_v45 = vpop.eup %3614 }
 0x255   :  { %v1535_v26 = vand.u32 4294901760, %v3615_v45 }
 0x257   :  { %1641 = vmatmul.f32.vlgmr.msrb.gmra.mxu3 %v1535_v26  ;;  %v1536_v53 = vsub.f32 %v3615_v45, %v1535_v26  ;;  %v5356_v45 = vld [vmem:[#allocation44_spill] sm:$0xff] }
 0x258   :  { %2043 = vmatpush.msrb.mxu3 %v3823_v44 }
 0x259   :  { %1695 = vmatmul.f32.vlgmr.msra.gmra.mxu0 %v1536_v53  ;;  %v1537_v23 = vand.u32 4294901760, %v1536_v53 }
 0x25a   :  { %2045 = vmatpush.msrb.mxu3 %v3837_v50  ;;  %2084 = vmatpush.msra.mxu0 %v5290_v32 }
 0x25b   :  { %1734 = vmatmul.f32.vlgmr.msra.gmra.mxu1 %v1537_v23  ;;  %v1538_v38 = vsub.f32 %v1536_v53, %v1537_v23  ;;  %v5353_v23 = vld [vmem:[#allocation43_spill] sm:$0xff]  ;;  %v5354_v53 = vld [vmem:[#allocation20_spill] sm:$0xff] }
 0x25c   :  { %2047 = vmatpush.msrb.mxu3 %v3839_v51  ;;  %2151 = vmatpush.msra.mxu1 %v3823_v44 }
 0x25d   :  { %v1539_v14 = vand.u32 4294901760, %v1538_v38  ;;  %2088 = vmatpush.msra.mxu0 %v5291_v47  ;;  %v5368_v38 = vld [vmem:[#allocation50_spill] sm:$0xff] }
 0x25e   :  { %2049 = vmatpush.msrb.mxu3 %v3852_v56  ;;  %2153 = vmatpush.msra.mxu1 %v3837_v50 }
 0x25f   :  { %1540 = vmatmul.f32.vlgmr.msrb.gmra.mxu2 %v1539_v14  ;;  %1840 = vmatmul.f32.vlgmr.msra.gmra.mxu3 %v1535_v26  ;;  %v5369_v14 = vld [vmem:[#allocation51_spill] sm:$0xff] }
 0x260   :  { %1990 = vmatpush.msrb.mxu2 %v3835_v49  ;;  %2051 = vmatpush.msrb.mxu3 %v3860_v61 }
 0x261   :  { %2155 = vmatpush.msra.mxu1 %v3839_v51  ;;  %2092 = vmatpush.msra.mxu0 %v5292_v1 }
 0x262   :  { %1993 = vmatpush.msrb.mxu2 %v3850_v55  ;;  %2053 = vmatpush.msrb.mxu3 %v3883_v6 }
 0x263   :  { %2157 = vmatpush.msra.mxu1 %v3852_v56  ;;  %2096 = vmatpush.msra.mxu0 %v5293_v15 }
 0x264   :  { %1996 = vmatpush.msrb.mxu2 %v3855_v57  ;;  %2055 = vmatpush.msrb.mxu3 %v3907_v20 }
 0x265   :  { %2159 = vmatpush.msra.mxu1 %v3860_v61  ;;  %2100 = vmatpush.msra.mxu0 %v5294_v9 }
 0x266   :  { %1999 = vmatpush.msrb.mxu2 %v3875_v3  ;;  %2057 = vmatpush.msrb.mxu3 %v3923_v35 }
 0x267   :  { %1803 = vmatmul.f32.vlgmr.msra.gmra.mxu2 %v1535_v26  ;;  %2161 = vmatpush.msra.mxu1 %v3883_v6  ;;  %v5355_v26 = vld [vmem:[#allocation48_spill] sm:$0xff] }
 0x268   :  { %2002 = vmatpush.msrb.mxu2 %v3886_v7  ;;  %2059 = vmatpush.msrb.mxu3 %v3935_v41 }
 0x269   :  { %2163 = vmatpush.msra.mxu1 %v3907_v20  ;;  %2104 = vmatpush.msra.mxu0 %v5295_v19 }
 0x26a   :  { %2005 = vmatpush.msrb.mxu2 %v3915_v29  ;;  %2061 = vmatpush.msrb.mxu3 %v3953_v59 }
 0x26b   :  { %2165 = vmatpush.msra.mxu1 %v3923_v35  ;;  %2108 = vmatpush.msra.mxu0 %v5296_v31 }
 0x26c   :  { %2008 = vmatpush.msrb.mxu2 %v3926_v36  ;;  %2063 = vmatpush.msrb.mxu3 %v3975_v21 }
 0x26d   :  { %2167 = vmatpush.msra.mxu1 %v3935_v41  ;;  %2112 = vmatpush.msra.mxu0 %v5297_v63 }
 0x26e   :  { %2011 = vmatpush.msrb.mxu2 %v3946_v46  ;;  %2065 = vmatpush.msrb.mxu3 %v3992_v28 }
 0x26f   :  { %2169 = vmatpush.msra.mxu1 %v3953_v59  ;;  %2116 = vmatpush.msra.mxu0 %v5298_v33 }
 0x270   :  { %2014 = vmatpush.msrb.mxu2 %v3956_v62  ;;  %2067 = vmatpush.msrb.mxu3 %v4013_v16 }
 0x271   :  { %2171 = vmatpush.msra.mxu1 %v3975_v21  ;;  %2120 = vmatpush.msra.mxu0 %v5299_v30 }
 0x272   :  { %2017 = vmatpush.msrb.mxu2 %v3978_v27  ;;  %2069 = vmatpush.msrb.mxu3 %v4026_v60 }
 0x273   :  { %2173 = vmatpush.msra.mxu1 %v3992_v28  ;;  %2124 = vmatpush.msra.mxu0 %v4019_v2 }
 0x274   :  { %2020 = vmatpush.msrb.mxu2 %v5306_v43  ;;  %2071 = vmatpush.msrb.mxu3 %v5307_v25 }
 0x275   :  { %2175 = vmatpush.msra.mxu1 %v4013_v16  ;;  %2128 = vmatpush.msra.mxu0 %v5308_v13 }
 0x276   :  { %2023 = vmatpush.msrb.mxu2 %v5309_v48  ;;  %2073 = vmatpush.msrb.mxu3 %v5310_v34 }
 0x277   :  { %2177 = vmatpush.msra.mxu1 %v4026_v60  ;;  %2132 = vmatpush.msra.mxu0 %v5311_v4 }
 0x278   :  { %2026 = vmatpush.msrb.mxu2 %v5312_v17  ;;  %2235 = vmatpush.msra.mxu3 %v5313_v39 }
 0x279   :  { %2179 = vmatpush.msra.mxu1 %v5307_v25  ;;  %2136 = vmatpush.msra.mxu0 %v5314_v0 }
 0x27a   :  { %2029 = vmatpush.msrb.mxu2 %v5315_v11  ;;  %2241 = vmatpush.msra.mxu3 %v5316_v40 }
 0x27b   :  { %2181 = vmatpush.msra.mxu1 %v5310_v34  ;;  %2140 = vmatpush.msra.mxu0 %v5317_v12 }
 0x27c   :  { %2032 = vmatpush.msrb.mxu2 %v5353_v23  ;;  %2247 = vmatpush.msra.mxu3 %v5354_v53 }
 0x27d   :  { %2144 = vmatpush.msra.mxu0 %v5355_v26 }
 0x27e   :  { %2035 = vmatpush.msrb.mxu2 %v5356_v45  ;;  %2253 = vmatpush.msra.mxu3 %v5357_v8 }
 0x280   :  { %2190 = vmatpush.msra.mxu2 %v3823_v44  ;;  %2259 = vmatpush.msra.mxu3 %v5358_v5 }
 0x282   :  { %2192 = vmatpush.msra.mxu2 %v3837_v50  ;;  %2265 = vmatpush.msra.mxu3 %v5359_v52 }
 0x284   :  { %2194 = vmatpush.msra.mxu2 %v3839_v51  ;;  %2271 = vmatpush.msra.mxu3 %v5360_v58 }
 0x286   :  { %2196 = vmatpush.msra.mxu2 %v3852_v56  ;;  %2277 = vmatpush.msra.mxu3 %v5361_v24 }
 0x288   :  { %2198 = vmatpush.msra.mxu2 %v3860_v61  ;;  %2283 = vmatpush.msra.mxu3 %v5362_v54 }
 0x28a   :  { %2200 = vmatpush.msra.mxu2 %v3883_v6  ;;  %2289 = vmatpush.msra.mxu3 %v5363_v18 }
 0x28c   :  { %2202 = vmatpush.msra.mxu2 %v3907_v20  ;;  %2295 = vmatpush.msra.mxu3 %v5364_v42 }
 0x28e   :  { %2204 = vmatpush.msra.mxu2 %v3923_v35  ;;  %2301 = vmatpush.msra.mxu3 %v5365_v10 }
 0x290   :  { %2206 = vmatpush.msra.mxu2 %v3935_v41  ;;  %2307 = vmatpush.msra.mxu3 %v5366_v22 }
 0x292   :  { %2208 = vmatpush.msra.mxu2 %v3953_v59  ;;  %2313 = vmatpush.msra.mxu3 %v5367_v37 }
 0x294   :  { %2210 = vmatpush.msra.mxu2 %v3975_v21  ;;  %2319 = vmatpush.msra.mxu3 %v5368_v38 }
 0x296   :  { %2212 = vmatpush.msra.mxu2 %v3992_v28  ;;  %2325 = vmatpush.msra.mxu3 %v5369_v14  ;;  %v5370_v14 = vld [vmem:[#allocation12_spill] sm:$0xff] }
 0x298   :  { %2214 = vmatpush.msra.mxu2 %v4013_v16 }
 0x29a   :  { %2216 = vmatpush.msra.mxu2 %v4026_v60 }
 0x29c   :  { %2218 = vmatpush.msra.mxu2 %v5307_v25 }
 0x29e   :  { %2220 = vmatpush.msra.mxu2 %v5310_v34 }
 0x2d6   :  { %v1696_v37 = vpop.f32.mrf.mxu0 }
 0x2d8   :  { %v1735_v54 = vpop.f32.mrf.mxu1 }
 0x2da   :  { %v1642_v22 = vpop.f32.mrf.mxu3 }
 0x2e2   :  { %v1541_v10 = vpop.f32.mrf.mxu2  ;;  %v1841_v52 = vpop.f32.mrf.mxu3 }
 0x2e3   :  { %v1643_v42 = vadd.f32 %v1642_v22, %v1541_v10  ;;  %v5381_v10 = vld [vmem:[#allocation38_spill] sm:$0xff]  ;;  %v5382_v22 = vld [vmem:[#allocation41_spill] sm:$0xff] }
 0x2e5   :  { %v1697_v18 = vadd.f32 %v1696_v37, %v1643_v42  ;;  %v5380_v42 = vld [vmem:[#allocation34_spill] sm:$0xff]  ;;  %v5383_v37 = vld [vmem:[#allocation45_spill] sm:$0xff] }
 0x2e7   :  { %v1736_v24 = vadd.f32 %v1735_v54, %v1697_v18  ;;  %v5379_v18 = vld [vmem:[#allocation31_spill] sm:$0xff] }
 0x2ea   :  { %v1804_v38 = vpop.f32.mrf.mxu2 }
 0x2eb   :  { %v1805_v58 = vadd.f32 %v1804_v38, %v1736_v24  ;;  %v5378_v24 = vld [vmem:[#allocation29_spill] sm:$0xff]  ;;  %v5384_v38 = vld [vmem:[#allocation47_spill] sm:$0xff] }
 0x2ed   :  { %v1842_v5 = vadd.f32 %v1841_v52, %v1805_v58  ;;  %v5376_v52 = vld [vmem:[#allocation24_spill] sm:$0xff]  ;;  %v5377_v58 = vld [vmem:[#allocation27_spill] sm:$0xff] }
 0x2ef   :  { %v1844_v8 = vadd.f32 %v1842_v5, %v5370_v14  ;;  %v5385_v14 = vld [vmem:[#allocation49_spill] sm:$0xff] }
 0x2f1   :  { %3616 = vtanh.f32 %v1844_v8  ;;  %v5375_v8 = vld [vmem:[#allocation22_spill] sm:$0xff] }
 0x2f7   :  { %v3617_v45 = vpop.eup %3616 }
 0x2f8   :  { %v1878_v26 = vand.u32 4294901760, %v3617_v45 }
 0x2fa   :  { %1984 = vmatmul.f32.vlgmr.msrb.gmra.mxu1 %v1878_v26  ;;  %v1879_v53 = vsub.f32 %v3617_v45, %v1878_v26  ;;  %v5374_v45 = vld [vmem:[#allocation44_spill] sm:$0xff] }
 0x2fb   :  { %2386 = vmatpush.msrb.mxu1 %v3823_v44 }
 0x2fc   :  { %2038 = vmatmul.f32.vlgmr.msrb.gmra.mxu2 %v1879_v53  ;;  %v1880_v23 = vand.u32 4294901760, %v1879_v53 }
 0x2fd   :  { %2388 = vmatpush.msrb.mxu1 %v3837_v50  ;;  %2427 = vmatpush.msrb.mxu2 %v5290_v32 }
 0x2fe   :  { %2077 = vmatmul.f32.vlgmr.msrb.gmra.mxu3 %v1880_v23  ;;  %v1881_v54 = vsub.f32 %v1879_v53, %v1880_v23  ;;  %v5371_v23 = vld [vmem:[#allocation43_spill] sm:$0xff]  ;;  %v5372_v53 = vld [vmem:[#allocation20_spill] sm:$0xff] }
 0x2ff   :  { %2390 = vmatpush.msrb.mxu1 %v3839_v51  ;;  %2494 = vmatpush.msrb.mxu3 %v3823_v44 }
 0x300   :  { %v1882_v5 = vand.u32 4294901760, %v1881_v54  ;;  %2431 = vmatpush.msrb.mxu2 %v5291_v47  ;;  %v5386_v54 = vld [vmem:[#allocation50_spill] sm:$0xff] }
 0x301   :  { %2392 = vmatpush.msrb.mxu1 %v3852_v56  ;;  %2496 = vmatpush.msrb.mxu3 %v3837_v50 }
 0x302   :  { %1883 = vmatmul.f32.vlgmr.msrb.gmra.mxu0 %v1882_v5  ;;  %2183 = vmatmul.f32.vlgmr.msra.gmra.mxu1 %v1878_v26  ;;  %v5387_v5 = vld [vmem:[#allocation51_spill] sm:$0xff] }
 0x303   :  { %2333 = vmatpush.msrb.mxu0 %v3835_v49  ;;  %2394 = vmatpush.msrb.mxu1 %v3860_v61 }
 0x304   :  { %2498 = vmatpush.msrb.mxu3 %v3839_v51  ;;  %2435 = vmatpush.msrb.mxu2 %v5292_v1 }
 0x305   :  { %2336 = vmatpush.msrb.mxu0 %v3850_v55  ;;  %2396 = vmatpush.msrb.mxu1 %v3883_v6 }
 0x306   :  { %2500 = vmatpush.msrb.mxu3 %v3852_v56  ;;  %2439 = vmatpush.msrb.mxu2 %v5293_v15 }
 0x307   :  { %2339 = vmatpush.msrb.mxu0 %v3855_v57  ;;  %2398 = vmatpush.msrb.mxu1 %v3907_v20 }
 0x308   :  { %2502 = vmatpush.msrb.mxu3 %v3860_v61  ;;  %2443 = vmatpush.msrb.mxu2 %v5294_v9 }
 0x309   :  { %2342 = vmatpush.msrb.mxu0 %v3875_v3  ;;  %2400 = vmatpush.msrb.mxu1 %v3923_v35 }
 0x30a   :  { %2146 = vmatmul.f32.vlgmr.msra.gmra.mxu0 %v1878_v26  ;;  %2504 = vmatpush.msrb.mxu3 %v3883_v6  ;;  %v5373_v26 = vld [vmem:[#allocation48_spill] sm:$0xff] }
 0x30b   :  { %2345 = vmatpush.msrb.mxu0 %v3886_v7  ;;  %2402 = vmatpush.msrb.mxu1 %v3935_v41 }
 0x30c   :  { %2506 = vmatpush.msrb.mxu3 %v3907_v20  ;;  %2447 = vmatpush.msrb.mxu2 %v5295_v19 }
 0x30d   :  { %2348 = vmatpush.msrb.mxu0 %v3915_v29  ;;  %2404 = vmatpush.msrb.mxu1 %v3953_v59 }
 0x30e   :  { %2508 = vmatpush.msrb.mxu3 %v3923_v35  ;;  %2451 = vmatpush.msrb.mxu2 %v5296_v31 }
 0x30f   :  { %2351 = vmatpush.msrb.mxu0 %v3926_v36  ;;  %2406 = vmatpush.msrb.mxu1 %v3975_v21 }
 0x310   :  { %2510 = vmatpush.msrb.mxu3 %v3935_v41  ;;  %2455 = vmatpush.msrb.mxu2 %v5297_v63 }
 0x311   :  { %2354 = vmatpush.msrb.mxu0 %v3946_v46  ;;  %2408 = vmatpush.msrb.mxu1 %v3992_v28 }
 0x312   :  { %2512 = vmatpush.msrb.mxu3 %v3953_v59  ;;  %2459 = vmatpush.msrb.mxu2 %v5298_v33 }
 0x313   :  { %2357 = vmatpush.msrb.mxu0 %v3956_v62  ;;  %2410 = vmatpush.msrb.mxu1 %v4013_v16 }
 0x314   :  { %2514 = vmatpush.msrb.mxu3 %v3975_v21  ;;  %2463 = vmatpush.msrb.mxu2 %v5299_v30 }
 0x315   :  { %2360 = vmatpush.msrb.mxu0 %v3978_v27  ;;  %2412 = vmatpush.msrb.mxu1 %v4026_v60 }
 0x316   :  { %2516 = vmatpush.msrb.mxu3 %v3992_v28  ;;  %2467 = vmatpush.msrb.mxu2 %v4019_v2 }
 0x317   :  { %2363 = vmatpush.msrb.mxu0 %v5306_v43  ;;  %2414 = vmatpush.msrb.mxu1 %v5307_v25 }
 0x318   :  { %2518 = vmatpush.msrb.mxu3 %v4013_v16  ;;  %2471 = vmatpush.msrb.mxu2 %v5308_v13 }
 0x319   :  { %2366 = vmatpush.msrb.mxu0 %v5309_v48  ;;  %2416 = vmatpush.msrb.mxu1 %v5310_v34 }
 0x31a   :  { %2520 = vmatpush.msrb.mxu3 %v4026_v60  ;;  %2475 = vmatpush.msrb.mxu2 %v5311_v4 }
 0x31b   :  { %2369 = vmatpush.msrb.mxu0 %v5312_v17  ;;  %2578 = vmatpush.msra.mxu1 %v5313_v39 }
 0x31c   :  { %2522 = vmatpush.msrb.mxu3 %v5307_v25  ;;  %2479 = vmatpush.msrb.mxu2 %v5314_v0 }
 0x31d   :  { %2372 = vmatpush.msrb.mxu0 %v5315_v11  ;;  %2584 = vmatpush.msra.mxu1 %v5316_v40 }
 0x31e   :  { %2524 = vmatpush.msrb.mxu3 %v5310_v34  ;;  %2483 = vmatpush.msrb.mxu2 %v5317_v12 }
 0x31f   :  { %2375 = vmatpush.msrb.mxu0 %v5371_v23  ;;  %2590 = vmatpush.msra.mxu1 %v5372_v53 }
 0x320   :  { %2487 = vmatpush.msrb.mxu2 %v5373_v26 }
 0x321   :  { %2378 = vmatpush.msrb.mxu0 %v5374_v45  ;;  %2596 = vmatpush.msra.mxu1 %v5375_v8 }
 0x323   :  { %2533 = vmatpush.msra.mxu0 %v3823_v44  ;;  %2602 = vmatpush.msra.mxu1 %v5376_v52 }
 0x325   :  { %2535 = vmatpush.msra.mxu0 %v3837_v50  ;;  %2608 = vmatpush.msra.mxu1 %v5377_v58 }
 0x327   :  { %2537 = vmatpush.msra.mxu0 %v3839_v51  ;;  %2614 = vmatpush.msra.mxu1 %v5378_v24 }
 0x329   :  { %2539 = vmatpush.msra.mxu0 %v3852_v56  ;;  %2620 = vmatpush.msra.mxu1 %v5379_v18 }
 0x32b   :  { %2541 = vmatpush.msra.mxu0 %v3860_v61  ;;  %2626 = vmatpush.msra.mxu1 %v5380_v42 }
 0x32d   :  { %2543 = vmatpush.msra.mxu0 %v3883_v6  ;;  %2632 = vmatpush.msra.mxu1 %v5381_v10 }
 0x32f   :  { %2545 = vmatpush.msra.mxu0 %v3907_v20  ;;  %2638 = vmatpush.msra.mxu1 %v5382_v22 }
 0x331   :  { %2547 = vmatpush.msra.mxu0 %v3923_v35  ;;  %2644 = vmatpush.msra.mxu1 %v5383_v37 }
 0x333   :  { %2549 = vmatpush.msra.mxu0 %v3935_v41  ;;  %2650 = vmatpush.msra.mxu1 %v5384_v38 }
 0x335   :  { %2551 = vmatpush.msra.mxu0 %v3953_v59  ;;  %2656 = vmatpush.msra.mxu1 %v5385_v14 }
 0x337   :  { %2553 = vmatpush.msra.mxu0 %v3975_v21  ;;  %2662 = vmatpush.msra.mxu1 %v5386_v54 }
 0x339   :  { %2555 = vmatpush.msra.mxu0 %v3992_v28  ;;  %2668 = vmatpush.msra.mxu1 %v5387_v5  ;;  %v5388_v5 = vld [vmem:[#allocation13_spill] sm:$0xff] }
 0x33b   :  { %2557 = vmatpush.msra.mxu0 %v4013_v16 }
 0x33d   :  { %2559 = vmatpush.msra.mxu0 %v4026_v60 }
 0x33f   :  { %2561 = vmatpush.msra.mxu0 %v5307_v25 }
 0x341   :  { %2563 = vmatpush.msra.mxu0 %v5310_v34 }
 0x377   :  { %v1985_v38 = vpop.f32.mrf.mxu1 }
 0x37f   :  { %v1884_v37 = vpop.f32.mrf.mxu0  ;;  %v2039_v14 = vpop.f32.mrf.mxu2 }
 0x380   :  { %v1986_v22 = vadd.f32 %v1985_v38, %v1884_v37  ;;  %v2184_v58 = vpop.f32.mrf.mxu1  ;;  %v5401_v37 = vld [vmem:[#allocation45_spill] sm:$0xff]  ;;  %v5402_v38 = vld [vmem:[#allocation47_spill] sm:$0xff] }
 0x381   :  { %v2078_v42 = vpop.f32.mrf.mxu3 }
 0x382   :  { %v2040_v10 = vadd.f32 %v2039_v14, %v1986_v22  ;;  %v5400_v22 = vld [vmem:[#allocation41_spill] sm:$0xff] }
 0x383   :  { %v5403_v14 = vld [vmem:[#allocation49_spill] sm:$0xff] }
 0x384   :  { %v2079_v18 = vadd.f32 %v2078_v42, %v2040_v10  ;;  %v5399_v10 = vld [vmem:[#allocation38_spill] sm:$0xff] }
 0x387   :  { %v2147_v54 = vpop.f32.mrf.mxu0 }
 0x388   :  { %v2148_v24 = vadd.f32 %v2147_v54, %v2079_v18  ;;  %v5398_v18 = vld [vmem:[#allocation34_spill] sm:$0xff] }
 0x389   :  { %v5404_v54 = vld [vmem:[#allocation50_spill] sm:$0xff] }
 0x38a   :  { %v2185_v52 = vadd.f32 %v2184_v58, %v2148_v24  ;;  %v5396_v58 = vld [vmem:[#allocation29_spill] sm:$0xff]  ;;  %v5397_v24 = vld [vmem:[#allocation31_spill] sm:$0xff] }
 0x38c   :  { %v2187_v8 = vadd.f32 %v2185_v52, %v5388_v5  ;;  %v5405_v5 = vld [vmem:[#allocation51_spill] sm:$0xff] }
 0x38e   :  { %3618 = vtanh.f32 %v2187_v8  ;;  %v5394_v8 = vld [vmem:[#allocation24_spill] sm:$0xff] }
 0x394   :  { %v3619_v45 = vpop.eup %3618 }
 0x395   :  { %v2221_v26 = vand.u32 4294901760, %v3619_v45 }
 0x397   :  { %2327 = vmatmul.f32.vlgmr.msra.gmra.mxu3 %v2221_v26  ;;  %v2222_v53 = vsub.f32 %v3619_v45, %v2221_v26  ;;  %v5392_v45 = vld [vmem:[#allocation44_spill] sm:$0xff] }
 0x398   :  { %2729 = vmatpush.msra.mxu3 %v3823_v44 }
 0x399   :  { %2381 = vmatmul.f32.vlgmr.msrb.gmra.mxu0 %v2222_v53  ;;  %v2223_v23 = vand.u32 4294901760, %v2222_v53 }
 0x39a   :  { %2731 = vmatpush.msra.mxu3 %v3837_v50  ;;  %2770 = vmatpush.msrb.mxu0 %v5290_v32 }
 0x39b   :  { %2420 = vmatmul.f32.vlgmr.msrb.gmra.mxu1 %v2223_v23  ;;  %v2224_v42 = vsub.f32 %v2222_v53, %v2223_v23  ;;  %v5389_v23 = vld [vmem:[#allocation43_spill] sm:$0xff]  ;;  %v5390_v53 = vld [vmem:[#allocation20_spill] sm:$0xff] }
 0x39c   :  { %2733 = vmatpush.msra.mxu3 %v3839_v51  ;;  %2837 = vmatpush.msrb.mxu1 %v3823_v44 }
 0x39d   :  { %v2225_v52 = vand.u32 4294901760, %v2224_v42  ;;  %2774 = vmatpush.msrb.mxu0 %v5291_v47 }
 0x39e   :  { %2735 = vmatpush.msra.mxu3 %v3852_v56  ;;  %2839 = vmatpush.msrb.mxu1 %v3837_v50 }
 0x39f   :  { %2226 = vmatmul.f32.vlgmr.msra.gmra.mxu2 %v2225_v52  ;;  %2526 = vmatmul.f32.vlgmr.msrb.gmra.mxu3 %v2221_v26 }
 0x3a0   :  { %2676 = vmatpush.msra.mxu2 %v3835_v49  ;;  %2737 = vmatpush.msra.mxu3 %v3860_v61 }
 0x3a1   :  { %2841 = vmatpush.msrb.mxu1 %v3839_v51  ;;  %2778 = vmatpush.msrb.mxu0 %v5292_v1 }
 0x3a2   :  { %2679 = vmatpush.msra.mxu2 %v3850_v55  ;;  %2739 = vmatpush.msra.mxu3 %v3883_v6 }
 0x3a3   :  { %2843 = vmatpush.msrb.mxu1 %v3852_v56  ;;  %2782 = vmatpush.msrb.mxu0 %v5293_v15 }
 0x3a4   :  { %2682 = vmatpush.msra.mxu2 %v3855_v57  ;;  %2741 = vmatpush.msra.mxu3 %v3907_v20 }
 0x3a5   :  { %2845 = vmatpush.msrb.mxu1 %v3860_v61  ;;  %2786 = vmatpush.msrb.mxu0 %v5294_v9 }
 0x3a6   :  { %2685 = vmatpush.msra.mxu2 %v3875_v3  ;;  %2743 = vmatpush.msra.mxu3 %v3923_v35 }
 0x3a7   :  { %2489 = vmatmul.f32.vlgmr.msrb.gmra.mxu2 %v2221_v26  ;;  %2847 = vmatpush.msrb.mxu1 %v3883_v6  ;;  %v5391_v26 = vld [vmem:[#allocation48_spill] sm:$0xff] }
 0x3a8   :  { %2688 = vmatpush.msra.mxu2 %v3886_v7  ;;  %2745 = vmatpush.msra.mxu3 %v3935_v41 }
 0x3a9   :  { %2849 = vmatpush.msrb.mxu1 %v3907_v20  ;;  %2790 = vmatpush.msrb.mxu0 %v5295_v19 }
 0x3aa   :  { %2691 = vmatpush.msra.mxu2 %v3915_v29  ;;  %2747 = vmatpush.msra.mxu3 %v3953_v59 }
 0x3ab   :  { %2851 = vmatpush.msrb.mxu1 %v3923_v35  ;;  %2794 = vmatpush.msrb.mxu0 %v5296_v31 }
 0x3ac   :  { %2694 = vmatpush.msra.mxu2 %v3926_v36  ;;  %2749 = vmatpush.msra.mxu3 %v3975_v21 }
 0x3ad   :  { %2853 = vmatpush.msrb.mxu1 %v3935_v41  ;;  %2798 = vmatpush.msrb.mxu0 %v5297_v63 }
 0x3ae   :  { %2697 = vmatpush.msra.mxu2 %v3946_v46  ;;  %2751 = vmatpush.msra.mxu3 %v3992_v28 }
 0x3af   :  { %2855 = vmatpush.msrb.mxu1 %v3953_v59  ;;  %2802 = vmatpush.msrb.mxu0 %v5298_v33 }
 0x3b0   :  { %2700 = vmatpush.msra.mxu2 %v3956_v62  ;;  %2753 = vmatpush.msra.mxu3 %v4013_v16 }
 0x3b1   :  { %2857 = vmatpush.msrb.mxu1 %v3975_v21  ;;  %2806 = vmatpush.msrb.mxu0 %v5299_v30 }
 0x3b2   :  { %2703 = vmatpush.msra.mxu2 %v3978_v27  ;;  %2755 = vmatpush.msra.mxu3 %v4026_v60 }
 0x3b3   :  { %2859 = vmatpush.msrb.mxu1 %v3992_v28  ;;  %2810 = vmatpush.msrb.mxu0 %v4019_v2 }
 0x3b4   :  { %2706 = vmatpush.msra.mxu2 %v5306_v43  ;;  %2757 = vmatpush.msra.mxu3 %v5307_v25 }
 0x3b5   :  { %2861 = vmatpush.msrb.mxu1 %v4013_v16  ;;  %2814 = vmatpush.msrb.mxu0 %v5308_v13 }
 0x3b6   :  { %2709 = vmatpush.msra.mxu2 %v5309_v48  ;;  %2759 = vmatpush.msra.mxu3 %v5310_v34 }
 0x3b7   :  { %2863 = vmatpush.msrb.mxu1 %v4026_v60  ;;  %2818 = vmatpush.msrb.mxu0 %v5311_v4 }
 0x3b8   :  { %2712 = vmatpush.msra.mxu2 %v5312_v17  ;;  %2921 = vmatpush.msrb.mxu3 %v5313_v39  ;;  %v5393_v39 = vld [vmem:[#allocation22_spill] sm:$0xff] }
 0x3b9   :  { %2865 = vmatpush.msrb.mxu1 %v5307_v25  ;;  %2822 = vmatpush.msrb.mxu0 %v5314_v0 }
 0x3ba   :  { %2715 = vmatpush.msra.mxu2 %v5315_v11  ;;  %2927 = vmatpush.msrb.mxu3 %v5316_v40  ;;  %v5395_v40 = vld [vmem:[#allocation27_spill] sm:$0xff] }
 0x3bb   :  { %2867 = vmatpush.msrb.mxu1 %v5310_v34  ;;  %2826 = vmatpush.msrb.mxu0 %v5317_v12 }
 0x3bc   :  { %2718 = vmatpush.msra.mxu2 %v5389_v23  ;;  %2933 = vmatpush.msrb.mxu3 %v5390_v53 }
 0x3bd   :  { %2830 = vmatpush.msrb.mxu0 %v5391_v26 }
 0x3be   :  { %2721 = vmatpush.msra.mxu2 %v5392_v45  ;;  %2939 = vmatpush.msrb.mxu3 %v5393_v39 }
 0x3c0   :  { %2876 = vmatpush.msrb.mxu2 %v3823_v44  ;;  %2945 = vmatpush.msrb.mxu3 %v5394_v8 }
 0x3c2   :  { %2878 = vmatpush.msrb.mxu2 %v3837_v50  ;;  %2951 = vmatpush.msrb.mxu3 %v5395_v40 }
 0x3c4   :  { %2880 = vmatpush.msrb.mxu2 %v3839_v51  ;;  %2957 = vmatpush.msrb.mxu3 %v5396_v58 }
 0x3c6   :  { %2882 = vmatpush.msrb.mxu2 %v3852_v56  ;;  %2963 = vmatpush.msrb.mxu3 %v5397_v24 }
 0x3c8   :  { %2884 = vmatpush.msrb.mxu2 %v3860_v61  ;;  %2969 = vmatpush.msrb.mxu3 %v5398_v18 }
 0x3ca   :  { %2886 = vmatpush.msrb.mxu2 %v3883_v6  ;;  %2975 = vmatpush.msrb.mxu3 %v5399_v10 }
 0x3cc   :  { %2888 = vmatpush.msrb.mxu2 %v3907_v20  ;;  %2981 = vmatpush.msrb.mxu3 %v5400_v22 }
 0x3ce   :  { %2890 = vmatpush.msrb.mxu2 %v3923_v35  ;;  %2987 = vmatpush.msrb.mxu3 %v5401_v37  ;;  %v5406_v37 = vld [vmem:[#allocation14_spill] sm:$0xff] }
 0x3d0   :  { %2892 = vmatpush.msrb.mxu2 %v3935_v41  ;;  %2993 = vmatpush.msrb.mxu3 %v5402_v38 }
 0x3d2   :  { %2894 = vmatpush.msrb.mxu2 %v3953_v59  ;;  %2999 = vmatpush.msrb.mxu3 %v5403_v14 }
 0x3d4   :  { %2896 = vmatpush.msrb.mxu2 %v3975_v21  ;;  %3005 = vmatpush.msrb.mxu3 %v5404_v54 }
 0x3d6   :  { %2898 = vmatpush.msrb.mxu2 %v3992_v28  ;;  %3011 = vmatpush.msrb.mxu3 %v5405_v5 }
 0x3d8   :  { %2900 = vmatpush.msrb.mxu2 %v4013_v16 }
 0x3da   :  { %2902 = vmatpush.msrb.mxu2 %v4026_v60 }
 0x3dc   :  { %2904 = vmatpush.msrb.mxu2 %v5307_v25 }
 0x3de   :  { %2906 = vmatpush.msrb.mxu2 %v5310_v34 }
 0x416   :  { %v2382_v39 = vpop.f32.mrf.mxu0 }
 0x418   :  { %v2421_v40 = vpop.f32.mrf.mxu1 }
 0x41a   :  { %v2328_v42 = vpop.f32.mrf.mxu3 }
 0x422   :  { %v2227_v52 = vpop.f32.mrf.mxu2  ;;  %v2527_v10 = vpop.f32.mrf.mxu3 }
 0x423   :  { %v2329_v53 = vadd.f32 %v2328_v42, %v2227_v52 }
 0x425   :  { %v2383_v8 = vadd.f32 %v2382_v39, %v2329_v53 }
 0x427   :  { %v2422_v58 = vadd.f32 %v2421_v40, %v2383_v8 }
 0x42a   :  { %v2490_v24 = vpop.f32.mrf.mxu2 }
 0x42b   :  { %v2491_v18 = vadd.f32 %v2490_v24, %v2422_v58 }
 0x42d   :  { %v2528_v22 = vadd.f32 %v2527_v10, %v2491_v18 }
 0x42f   :  { %v2530_v38 = vadd.f32 %v2528_v22, %v5406_v37 }
 0x431   :  { %3620 = vtanh.f32 %v2530_v38 }
 0x437   :  { %v3621_v14 = vpop.eup %3620 }
 0x438   :  { %v2564_v54 = vand.u32 4294901760, %v3621_v14 }
 0x43a   :  { %2670 = vmatmul.f32.vlgmr.msra.gmra.mxu1 %v2564_v54  ;;  %v2565_v5 = vsub.f32 %v3621_v14, %v2564_v54 }
 0x43b   :  { %3072 = vmatpush.msra.mxu1 %v3823_v44 }
 0x43c   :  { %2724 = vmatmul.f32.vlgmr.msra.gmra.mxu2 %v2565_v5  ;;  %v2566_v45 = vand.u32 4294901760, %v2565_v5 }
 0x43d   :  { %3074 = vmatpush.msra.mxu1 %v3837_v50  ;;  %3113 = vmatpush.msra.mxu2 %v5290_v32 }
 0x43e   :  { %2763 = vmatmul.f32.vlgmr.msra.gmra.mxu3 %v2566_v45  ;;  %v2567_v42 = vsub.f32 %v2565_v5, %v2566_v45 }
 0x43f   :  { %3076 = vmatpush.msra.mxu1 %v3839_v51  ;;  %3180 = vmatpush.msra.mxu3 %v3823_v44 }
 0x440   :  { %v2568_v52 = vand.u32 4294901760, %v2567_v42  ;;  %3117 = vmatpush.msra.mxu2 %v5291_v47 }
 0x441   :  { %3078 = vmatpush.msra.mxu1 %v3852_v56  ;;  %3182 = vmatpush.msra.mxu3 %v3837_v50 }
 0x442   :  { %2569 = vmatmul.f32.vlgmr.msra.gmra.mxu0 %v2568_v52  ;;  %2869 = vmatmul.f32.vlgmr.msrb.gmra.mxu1 %v2564_v54 }
 0x443   :  { %3019 = vmatpush.msra.mxu0 %v3835_v49  ;;  %3080 = vmatpush.msra.mxu1 %v3860_v61 }
 0x444   :  { %3184 = vmatpush.msra.mxu3 %v3839_v51  ;;  %3121 = vmatpush.msra.mxu2 %v5292_v1 }
 0x445   :  { %3022 = vmatpush.msra.mxu0 %v3850_v55  ;;  %3082 = vmatpush.msra.mxu1 %v3883_v6 }
 0x446   :  { %3186 = vmatpush.msra.mxu3 %v3852_v56  ;;  %3125 = vmatpush.msra.mxu2 %v5293_v15 }
 0x447   :  { %3025 = vmatpush.msra.mxu0 %v3855_v57  ;;  %3084 = vmatpush.msra.mxu1 %v3907_v20 }
 0x448   :  { %3188 = vmatpush.msra.mxu3 %v3860_v61  ;;  %3129 = vmatpush.msra.mxu2 %v5294_v9  ;;  %v3233_v61 = vld [vmem:[#allocation5 + $0x78] sm:$0xff] }
 0x449   :  { %3028 = vmatpush.msra.mxu0 %v3875_v3  ;;  %3086 = vmatpush.msra.mxu1 %v3923_v35  ;;  %v3231_v3 = vld [vmem:[#allocation5 + $0x68] sm:$0xff] }
 0x44a   :  { %2832 = vmatmul.f32.vlgmr.msrb.gmra.mxu0 %v2564_v54  ;;  %3190 = vmatpush.msra.mxu3 %v3883_v6 }
 0x44b   :  { %3031 = vmatpush.msra.mxu0 %v3886_v7  ;;  %3088 = vmatpush.msra.mxu1 %v3935_v41  ;;  %v4921_v7 = vand.u32 4294901760, %v3233_v61 }
 0x44c   :  { %3192 = vmatpush.msra.mxu3 %v3907_v20  ;;  %3133 = vmatpush.msra.mxu2 %v5295_v19  ;;  %v4925_v20 = vand.u32 4294901760, %v3231_v3  ;;  %v5408_v19 = vld [vmem:[#allocation15_spill] sm:$0xff] }
 0x44d   :  { %3034 = vmatpush.msra.mxu0 %v3915_v29  ;;  %3090 = vmatpush.msra.mxu1 %v3953_v59  ;;  %v3230_v29 = vld [vmem:[#allocation5 + $0x60] sm:$0xff] }
 0x44e   :  { %3194 = vmatpush.msra.mxu3 %v3923_v35  ;;  %3137 = vmatpush.msra.mxu2 %v5296_v31  ;;  %v3228_v35 = vld [vmem:[#allocation5 + $0x50] sm:$0xff]  ;;  %v4940_v32 = vsub.f32 %v3231_v3, %v4925_v20 }
 0x44f   :  { %3037 = vmatpush.msra.mxu0 %v3926_v36  ;;  %3092 = vmatpush.msra.mxu1 %v3975_v21 }
 0x450   :  { %3196 = vmatpush.msra.mxu3 %v3935_v41  ;;  %3141 = vmatpush.msra.mxu2 %v5297_v63  ;;  %v4927_v41 = vand.u32 4294901760, %v3230_v29 }
 0x451   :  { %3040 = vmatpush.msra.mxu0 %v3946_v46  ;;  %3094 = vmatpush.msra.mxu1 %v3992_v28 }
 0x452   :  { %3198 = vmatpush.msra.mxu3 %v3953_v59  ;;  %3145 = vmatpush.msra.mxu2 %v5298_v33  ;;  %v4931_v59 = vand.u32 4294901760, %v3228_v35  ;;  %v4944_v47 = vsub.f32 %v3230_v29, %v4927_v41 }
 0x453   :  { %3043 = vmatpush.msra.mxu0 %v3956_v62  ;;  %3096 = vmatpush.msra.mxu1 %v4013_v16  ;;  %v3227_v62 = vld [vmem:[#allocation5 + $0x48] sm:$0xff] }
 0x454   :  { %3200 = vmatpush.msra.mxu3 %v3975_v21  ;;  %3149 = vmatpush.msra.mxu2 %v5299_v30  ;;  %v3229_v30 = vld [vmem:[#allocation5 + $0x58] sm:$0xff]  ;;  %v4950_v15 = vsub.f32 %v3228_v35, %v4931_v59  ;;  %v4952_v9 = vand.u32 4294901760, %v3227_v62  ;;  %v3222_v35 = vld [vmem:[#allocation5 + $0x20] sm:$0xff] }
 0x455   :  { %3046 = vmatpush.msra.mxu0 %v3978_v27  ;;  %3098 = vmatpush.msra.mxu1 %v4026_v60  ;;  %v4929_v46 = vand.u32 4294901760, %v3229_v30  ;;  %v4934_v27 = vsub.f32 %v3233_v61, %v4921_v7 }
 0x456   :  { %3202 = vmatpush.msra.mxu3 %v3992_v28  ;;  %3153 = vmatpush.msra.mxu2 %v4019_v2  ;;  %v5407_v28 = vld [vmem:[#allocation44_spill] sm:$0xff] }
 0x457   :  { %3049 = vmatpush.msra.mxu0 %v5306_v43  ;;  %3100 = vmatpush.msra.mxu1 %v5307_v25  ;;  %v3232_v2 = vld [vmem:[#allocation5 + $0x70] sm:$0xff]  ;;  %v4947_v1 = vsub.f32 %v3229_v30, %v4929_v46  ;;  %v3281_v63 = vand.u32 4294901760, %v4934_v27 }
 0x458   :  { %3204 = vmatpush.msra.mxu3 %v4013_v16  ;;  %3157 = vmatpush.msra.mxu2 %v5308_v13  ;;  %v4923_v16 = vand.u32 4294901760, %v3232_v2  ;;  %v3299_v13 = vand.u32 4294901760, %v4944_v47 }
 0x459   :  { %3052 = vmatpush.msra.mxu0 %v5309_v48  ;;  %3102 = vmatpush.msra.mxu1 %v5310_v34  ;;  %v3305_v48 = vand.u32 4294901760, %v4947_v1 }
 0x45a   :  { %3206 = vmatpush.msra.mxu3 %v4026_v60  ;;  %3161 = vmatpush.msra.mxu2 %v5311_v4  ;;  %v4937_v33 = vsub.f32 %v3232_v2, %v4923_v16  ;;  %v3226_v4 = vld [vmem:[#allocation5 + $0x40] sm:$0xff]  ;;  %v3300_v53 = vsub.f32 %v4944_v47, %v3299_v13  ;;  %v3224_v2 = vld [vmem:[#allocation5 + $0x30] sm:$0xff] }
 0x45b   :  { %3055 = vmatpush.msra.mxu0 %v5312_v17  ;;  %v3282_v17 = vsub.f32 %v4934_v27, %v3281_v63  ;;  %v4979_v39 = vand.u32 4294901760, %v3226_v4  ;;  %v3306_v8 = vsub.f32 %v4947_v1, %v3305_v48  ;;  %v5030_v3 = vand.u32 4294901760, %v3224_v2 }
 0x45c   :  { %3208 = vmatpush.msra.mxu3 %v5307_v25  ;;  %3165 = vmatpush.msra.mxu2 %v5314_v0  ;;  %v3287_v43 = vand.u32 4294901760, %v4937_v33  ;;  %v3293_v25 = vand.u32 4294901760, %v4940_v32  ;;  %v3301_v22 = vand.u32 4294901760, %v3300_v53 }
 0x45d   :  { %3058 = vmatpush.msra.mxu0 %v5315_v11  ;;  %v4986_v24 = vsub.f32 %v3226_v4, %v4979_v39  ;;  %v3307_v5 = vand.u32 4294901760, %v3306_v8  ;;  %v5033_v29 = vsub.f32 %v3224_v2, %v5030_v3 }
 0x45e   :  { %3210 = vmatpush.msra.mxu3 %v5310_v34  ;;  %3169 = vmatpush.msra.mxu2 %v5317_v12  ;;  %v4962_v34 = vsub.f32 %v3227_v62, %v4952_v9  ;;  %v3288_v0 = vsub.f32 %v4937_v33, %v3287_v43  ;;  %v3294_v11 = vsub.f32 %v4940_v32, %v3293_v25  ;;  %v3311_v12 = vand.u32 4294901760, %v4950_v15 }
 0x45f   :  { %3061 = vmatpush.msra.mxu0 %v5389_v23  ;;  %v3225_v23 = vld [vmem:[#allocation5 + $0x38] sm:$0xff]  ;;  %v3323_v38 = vand.u32 4294901760, %v4986_v24 }
 0x460   :  { %3173 = vmatpush.msra.mxu2 %v5391_v26  ;;  %v3283_v26 = vand.u32 4294901760, %v3282_v17  ;;  %v3289_v45 = vand.u32 4294901760, %v3288_v0  ;;  %v3295_v40 = vand.u32 4294901760, %v3294_v11  ;;  %v3317_v58 = vand.u32 4294901760, %v4962_v34  ;;  %v3220_v11 = vld [vmem:[#allocation5 + $0x10] sm:$0xff] }
 0x461   :  { %3064 = vmatpush.msra.mxu0 %v5407_v28  ;;  %v4989_v18 = vand.u32 4294901760, %v3225_v23  ;;  %v3312_v37 = vsub.f32 %v4950_v15, %v3311_v12  ;;  %v5069_v8 = vand.u32 4294901760, %v3220_v11 }
 0x462   :  { %3284 = vmatpush.msrb.mxu1 %v3283_v26  ;;  %v3318_v42 = vsub.f32 %v4962_v34, %v3317_v58 }
 0x463   :  { %3239 = vmatpush.msrb.mxu0 %v4921_v7  ;;  %v4996_v14 = vsub.f32 %v3225_v23, %v4989_v18 }
 0x464   :  { %3290 = vmatpush.msrb.mxu1 %v3289_v45 }
 0x465   :  { %3241 = vmatpush.msrb.mxu0 %v4923_v16  ;;  %v3329_v52 = vand.u32 4294901760, %v4996_v14 }
 0x466   :  { %3296 = vmatpush.msrb.mxu1 %v3295_v40  ;;  %v3219_v40 = vld [vmem:[#allocation5 + $0x8] sm:$0xff] }
 0x467   :  { %3243 = vmatpush.msrb.mxu0 %v4925_v20 }
 0x468   :  { %3302 = vmatpush.msrb.mxu1 %v3301_v22 }
 0x469   :  { %3245 = vmatpush.msrb.mxu0 %v4927_v41 }
 0x46a   :  { %3308 = vmatpush.msrb.mxu1 %v3307_v5  ;;  %v3358_v5 = vsub.f32 %v3220_v11, %v5069_v8 }
 0x46b   :  { %3247 = vmatpush.msrb.mxu0 %v4929_v46 }
 0x46d   :  { %3249 = vmatpush.msrb.mxu0 %v4931_v59 }
 0x46f   :  { %3251 = vmatpush.msrb.mxu0 %v4952_v9 }
 0x471   :  { %3253 = vmatpush.msrb.mxu0 %v4979_v39 }
 0x473   :  { %3255 = vmatpush.msrb.mxu0 %v4989_v18 }
 0x475   :  { %3257 = vmatpush.msrb.mxu0 %v5030_v3 }
 0x4b7   :  { %v2671_v44 = vpop.f32.mrf.mxu1 }
 0x4bf   :  { %v2570_v49 = vpop.f32.mrf.mxu0  ;;  %v2725_v51 = vpop.f32.mrf.mxu2 }
 0x4c0   :  { %v2672_v50 = vadd.f32 %v2671_v44, %v2570_v49  ;;  %v2870_v36 = vpop.f32.mrf.mxu1  ;;  %v3313_v44 = vand.u32 4294901760, %v3312_v37  ;;  %v3324_v49 = vsub.f32 %v4986_v24, %v3323_v38 }
 0x4c1   :  { %v2764_v56 = vpop.f32.mrf.mxu3 }
 0x4c2   :  { %v2726_v55 = vadd.f32 %v2725_v51, %v2672_v50  ;;  %v3319_v51 = vand.u32 4294901760, %v3318_v42  ;;  %3314 = vmatpush.msrb.mxu1 %v3313_v44  ;;  %v3218_v42 = vld [vmem:[#allocation5] sm:$0xff] }
 0x4c4   :  { %v2765_v57 = vadd.f32 %v2764_v56, %v2726_v55  ;;  %v3330_v55 = vsub.f32 %v4996_v14, %v3329_v52  ;;  %3320 = vmatpush.msrb.mxu1 %v3319_v51  ;;  %v3359_v51 = vand.u32 4294901760, %v3358_v5 }
 0x4c6   :  { %v3331_v61 = vand.u32 4294901760, %v3330_v55 }
 0x4c7   :  { %v2833_v60 = vpop.f32.mrf.mxu0 }
 0x4c8   :  { %v2834_v6 = vadd.f32 %v2833_v60, %v2765_v57  ;;  %v3325_v57 = vand.u32 4294901760, %v3324_v49 }
 0x4ca   :  { %v2871_v21 = vadd.f32 %v2870_v36, %v2834_v6  ;;  %3326 = vmatpush.msrb.mxu1 %v3325_v57  ;;  %v3223_v6 = vld [vmem:[#allocation5 + $0x28] sm:$0xff]  ;;  %v3335_v36 = vand.u32 4294901760, %v5033_v29 }
 0x4cb   :  { %v5035_v30 = vand.u32 4294901760, %v3223_v6 }
 0x4cc   :  { %v2873_v31 = vadd.f32 %v2871_v21, %v5408_v19  ;;  %3332 = vmatpush.msrb.mxu1 %v3331_v61  ;;  %v5043_v21 = vand.u32 4294901760, %v3222_v35  ;;  %v3221_v19 = vld [vmem:[#allocation5 + $0x18] sm:$0xff] }
 0x4cd   :  { %v5041_v62 = vsub.f32 %v3223_v6, %v5035_v30  ;;  %3259 = vmatpush.msrb.mxu0 %v5035_v30  ;;  %v5055_v0 = vand.u32 4294901760, %v3221_v19 }
 0x4ce   :  { %3622 = vtanh.f32 %v2873_v31  ;;  %v3336_v31 = vsub.f32 %v5033_v29, %v3335_v36  ;;  %v5053_v17 = vsub.f32 %v3222_v35, %v5043_v21 }
 0x4cf   :  { %v3341_v4 = vand.u32 4294901760, %v5041_v62  ;;  %3261 = vmatpush.msrb.mxu0 %v5043_v21  ;;  %v5065_v53 = vsub.f32 %v3221_v19, %v5055_v0 }
 0x4d0   :  { %v3337_v23 = vand.u32 4294901760, %v3336_v31  ;;  %v3347_v45 = vand.u32 4294901760, %v5053_v17 }
 0x4d1   :  { %v3342_v26 = vsub.f32 %v5041_v62, %v3341_v4  ;;  %3263 = vmatpush.msrb.mxu0 %v5055_v0  ;;  %v3353_v37 = vand.u32 4294901760, %v5065_v53 }
 0x4d2   :  { %3338 = vmatpush.msrb.mxu1 %v3337_v23  ;;  %v3348_v22 = vsub.f32 %v5053_v17, %v3347_v45 }
 0x4d3   :  { %3265 = vmatpush.msrb.mxu0 %v5069_v8  ;;  %v3354_v44 = vsub.f32 %v5065_v53, %v3353_v37 }
 0x4d4   :  { %v3623_v10 = vpop.eup %3622 }
 0x4d5   :  { %v2907_v54 = vand.u32 4294901760, %v3623_v10  ;;  %v3355_v55 = vand.u32 4294901760, %v3354_v44 }
 0x4d7   :  { %3013 = vmatmul.f32.vlgmr.msrb.gmra.mxu3 %v2907_v54  ;;  %v2908_v28 = vsub.f32 %v3623_v10, %v2907_v54  ;;  %v3343_v10 = vand.u32 4294901760, %v3342_v26 }
 0x4d8   :  { %3435 = vmatpush.msrb.mxu3 %v4921_v7 }
 0x4d9   :  { %3067 = vmatmul.f32.vlgmr.msra.gmra.mxu0 %v2908_v28  ;;  %v2909_v50 = vand.u32 4294901760, %v2908_v28  ;;  %3344 = vmatpush.msrb.mxu1 %v3343_v10 }
 0x4da   :  { %3437 = vmatpush.msrb.mxu3 %v4923_v16 }
 0x4db   :  { %3106 = vmatmul.f32.vlgmr.msra.gmra.mxu1 %v2909_v50  ;;  %v2910_v56 = vsub.f32 %v2908_v28, %v2909_v50  ;;  %v3349_v28 = vand.u32 4294901760, %v3348_v22  ;;  %v3268_v50 = vand.u32 4294901760, %v3218_v42 }
 0x4dc   :  { %3439 = vmatpush.msrb.mxu3 %v4925_v20 }
 0x4dd   :  { %v2911_v60 = vand.u32 4294901760, %v2910_v56  ;;  %3350 = vmatpush.msrb.mxu1 %v3349_v28  ;;  %v3370_v57 = vsub.f32 %v3218_v42, %v3268_v50 }
 0x4de   :  { %3441 = vmatpush.msrb.mxu3 %v4927_v41 }
 0x4df   :  { %2912 = vmatmul.f32.vlgmr.msrb.gmra.mxu2 %v2911_v60  ;;  %3212 = vmatmul.f32.vlgmr.msra.gmra.mxu3 %v2907_v54  ;;  %v3360_v60 = vsub.f32 %v3358_v5, %v3359_v51  ;;  %v3371_v2 = vand.u32 4294901760, %v3370_v57 }
 0x4e0   :  { %3382 = vmatpush.msrb.mxu2 %v4934_v27  ;;  %3443 = vmatpush.msrb.mxu3 %v4929_v46 }
 0x4e1   :  { %3356 = vmatpush.msrb.mxu1 %v3355_v55  ;;  %v3361_v6 = vand.u32 4294901760, %v3360_v60  ;;  %v3372_v19 = vsub.f32 %v3370_v57, %v3371_v2 }
 0x4e2   :  { %3385 = vmatpush.msrb.mxu2 %v4937_v33  ;;  %3445 = vmatpush.msrb.mxu3 %v4931_v59 }
 0x4e3   :  { %3362 = vmatpush.msrb.mxu1 %v3361_v6  ;;  %v3373_v31 = vand.u32 4294901760, %v3372_v19 }
 0x4e4   :  { %3388 = vmatpush.msrb.mxu2 %v4940_v32  ;;  %3447 = vmatpush.msrb.mxu3 %v4952_v9 }
 0x4e6   :  { %3391 = vmatpush.msrb.mxu2 %v4944_v47  ;;  %3449 = vmatpush.msrb.mxu3 %v4979_v39 }
 0x4e7   :  { %3175 = vmatmul.f32.vlgmr.msra.gmra.mxu2 %v2907_v54  ;;  %v5076_v54 = vand.u32 4294901760, %v3219_v40 }
 0x4e8   :  { %3394 = vmatpush.msrb.mxu2 %v4947_v1  ;;  %3451 = vmatpush.msrb.mxu3 %v4989_v18 }
 0x4e9   :  { %v3364_v49 = vsub.f32 %v3219_v40, %v5076_v54  ;;  %3267 = vmatpush.msrb.mxu0 %v5076_v54 }
 0x4ea   :  { %3397 = vmatpush.msrb.mxu2 %v4950_v15  ;;  %3453 = vmatpush.msrb.mxu3 %v5030_v3  ;;  %v5409_v15 = vld [vmem:[#allocation17_spill] sm:$0xff] }
 0x4eb   :  { %v3365_v56 = vand.u32 4294901760, %v3364_v49  ;;  %3269 = vmatpush.msrb.mxu0 %v3268_v50 }
 0x4ec   :  { %3400 = vmatpush.msrb.mxu2 %v4962_v34  ;;  %3455 = vmatpush.msrb.mxu3 %v5035_v30 }
 0x4ed   :  { %v3366_v61 = vsub.f32 %v3364_v49, %v3365_v56  ;;  %3476 = vmatpush.msra.mxu0 %v3281_v63 }
 0x4ee   :  { %3403 = vmatpush.msrb.mxu2 %v4986_v24  ;;  %3457 = vmatpush.msrb.mxu3 %v5043_v21 }
 0x4ef   :  { %v3367_v35 = vand.u32 4294901760, %v3366_v61  ;;  %3480 = vmatpush.msra.mxu0 %v3287_v43 }
 0x4f0   :  { %3406 = vmatpush.msrb.mxu2 %v4996_v14  ;;  %3459 = vmatpush.msrb.mxu3 %v5055_v0 }
 0x4f1   :  { %3484 = vmatpush.msra.mxu0 %v3293_v25  ;;  %3368 = vmatpush.msrb.mxu1 %v3367_v35 }
 0x4f2   :  { %3409 = vmatpush.msrb.mxu2 %v5033_v29  ;;  %3461 = vmatpush.msrb.mxu3 %v5069_v8 }
 0x4f3   :  { %3488 = vmatpush.msra.mxu0 %v3299_v13  ;;  %3374 = vmatpush.msrb.mxu1 %v3373_v31 }
 0x4f4   :  { %3412 = vmatpush.msrb.mxu2 %v5041_v62  ;;  %3463 = vmatpush.msrb.mxu3 %v5076_v54 }
 0x4f5   :  { %3543 = vmatpush.msra.mxu1 %v4921_v7  ;;  %3492 = vmatpush.msra.mxu0 %v3305_v48 }
 0x4f6   :  { %3415 = vmatpush.msrb.mxu2 %v5053_v17  ;;  %3465 = vmatpush.msrb.mxu3 %v3268_v50 }
 0x4f7   :  { %3545 = vmatpush.msra.mxu1 %v4923_v16  ;;  %3496 = vmatpush.msra.mxu0 %v3311_v12  ;;  %v3609_v12 = vld [vmem:[%s5137_s5] ss:$0 sm:$0xff] }
 0x4f8   :  { %3418 = vmatpush.msrb.mxu2 %v5065_v53 }
 0x4f9   :  { %3547 = vmatpush.msra.mxu1 %v4925_v20  ;;  %3500 = vmatpush.msra.mxu0 %v3317_v58 }
 0x4fa   :  { %3421 = vmatpush.msrb.mxu2 %v3358_v5 }
 0x4fb   :  { %3549 = vmatpush.msra.mxu1 %v4927_v41  ;;  %3504 = vmatpush.msra.mxu0 %v3323_v38 }
 0x4fc   :  { %3424 = vmatpush.msrb.mxu2 %v3364_v49 }
 0x4fd   :  { %3551 = vmatpush.msra.mxu1 %v4929_v46  ;;  %3508 = vmatpush.msra.mxu0 %v3329_v52 }
 0x4fe   :  { %3427 = vmatpush.msrb.mxu2 %v3370_v57 }
 0x4ff   :  { %3553 = vmatpush.msra.mxu1 %v4931_v59  ;;  %3512 = vmatpush.msra.mxu0 %v3335_v36 }
 0x501   :  { %3555 = vmatpush.msra.mxu1 %v4952_v9  ;;  %3516 = vmatpush.msra.mxu0 %v3341_v4 }
 0x503   :  { %3557 = vmatpush.msra.mxu1 %v4979_v39  ;;  %3520 = vmatpush.msra.mxu0 %v3347_v45 }
 0x505   :  { %3559 = vmatpush.msra.mxu1 %v4989_v18  ;;  %3524 = vmatpush.msra.mxu0 %v3353_v37 }
 0x507   :  { %3561 = vmatpush.msra.mxu1 %v5030_v3  ;;  %3528 = vmatpush.msra.mxu0 %v3359_v51 }
 0x509   :  { %3563 = vmatpush.msra.mxu1 %v5035_v30  ;;  %3532 = vmatpush.msra.mxu0 %v3365_v56 }
 0x50b   :  { %3565 = vmatpush.msra.mxu1 %v5043_v21  ;;  %3536 = vmatpush.msra.mxu0 %v3371_v2 }
 0x50d   :  { %3567 = vmatpush.msra.mxu1 %v5055_v0 }
 0x50f   :  { %3569 = vmatpush.msra.mxu1 %v5069_v8 }
 0x511   :  { %3571 = vmatpush.msra.mxu1 %v5076_v54 }
 0x513   :  { %3573 = vmatpush.msra.mxu1 %v3268_v50 }
 0x556   :  { %v3068_v41 = vpop.f32.mrf.mxu0 }
 0x558   :  { %v3107_v59 = vpop.f32.mrf.mxu1 }
 0x55a   :  { %v3014_v7 = vpop.f32.mrf.mxu3 }
 0x562   :  { %v2913_v16 = vpop.f32.mrf.mxu2  ;;  %v3213_v47 = vpop.f32.mrf.mxu3 }
 0x563   :  { %v3015_v20 = vadd.f32 %v3014_v7, %v2913_v16 }
 0x565   :  { %v3069_v46 = vadd.f32 %v3068_v41, %v3015_v20 }
 0x567   :  { %v3108_v27 = vadd.f32 %v3107_v59, %v3069_v46 }
 0x56a   :  { %v3176_v33 = vpop.f32.mrf.mxu2 }
 0x56b   :  { %v3177_v32 = vadd.f32 %v3176_v33, %v3108_v27 }
 0x56d   :  { %v3214_v1 = vadd.f32 %v3213_v47, %v3177_v32 }
 0x56f   :  { %v3216_v9 = vadd.f32 %v3214_v1, %v5409_v15 }
 0x571   :  { %3624 = vtanh.f32 %v3216_v9 }
 0x577   :  { %v3625_v63 = vpop.eup %3624 }
 0x578   :  { %v3270_v43 = vand.u32 4294901760, %v3625_v63 }
 0x57a   :  { %3376 = vmatmul.f32.vlgmr.msrb.gmra.mxu1 %v3270_v43  ;;  %v3271_v25 = vsub.f32 %v3625_v63, %v3270_v43 }
 0x57c   :  { %3430 = vmatmul.f32.vlgmr.msrb.gmra.mxu2 %v3271_v25  ;;  %v3272_v13 = vand.u32 4294901760, %v3271_v25 }
 0x57e   :  { %v3273_v48 = vsub.f32 %v3271_v25, %v3272_v13  ;;  %3469 = vmatmul.f32.vlgmr.msrb.gmra.mxu3 %v3272_v13 }
 0x580   :  { %v3274_v34 = vand.u32 4294901760, %v3273_v48 }
 0x582   :  { %3275 = vmatmul.f32.vlgmr.msrb.gmra.mxu0 %v3274_v34  ;;  %3575 = vmatmul.f32.vlgmr.msra.gmra.mxu1 %v3270_v43 }
 0x58a   :  { %3538 = vmatmul.f32.vlgmr.msra.gmra.mxu0 %v3270_v43 }
 0x5f7   :  { %v3377_v39 = vpop.f32.mrf.mxu1 }
 0x5ff   :  { %v3276_v58 = vpop.f32.mrf.mxu0  ;;  %v3431_v38 = vpop.f32.mrf.mxu2 }
 0x600   :  { %v3277_v24 = vadd.f32 %v3609_v12, %v3276_v58  ;;  %v3576_v36 = vpop.f32.mrf.mxu1 }
 0x601   :  { %v3470_v52 = vpop.f32.mrf.mxu3 }
 0x602   :  { %v3378_v18 = vadd.f32 %v3377_v39, %v3277_v24 }
 0x604   :  { %v3432_v14 = vadd.f32 %v3431_v38, %v3378_v18 }
 0x606   :  { %v3471_v3 = vadd.f32 %v3470_v52, %v3432_v14 }
 0x607   :  { %v3539_v29 = vpop.f32.mrf.mxu0 }
 0x608   :  { %v3540_v30 = vadd.f32 %v3539_v29, %v3471_v3 }
 0x60a   :  { %v3577_v62 = vadd.f32 %v3576_v36, %v3540_v30 }
 0x60c   :  { %3579 = vst [vmem:[#allocation7] sm:$0xff] %v3577_v62 }
 0x60d   :  { %3590 = dma.vmem_to_hbm [thread:$0]  %s3586_s29, 128, %s3588_s8, [#allocation4]  }
 0x60e   :  { %3702 = dma.done.wait [#allocation4], 128  }
 0x60f   :  { %3703 = vsyncadd [#allocation4], 4294967168 }
 0x610   :  { %3595 = vsyncpa [#allocation3], 1 }
 0x611   :  { %3596 = vsyncpa [#allocation6], 1 }
 0x612   :  { %3597 = vsyncpa [#allocation4], 1 }

</bundles_post_ra>
